<compile_context>
chip_gen: v5e
topology: v5e:2x2
jax: 0.10.0
libtpu: 0.0.40
codegen_flags: <defaults>
</compile_context>

<pallas_src>
import math
import jax
import jax.numpy as jnp
from jax.experimental import pallas as pl
from jax.experimental.pallas import tpu as pltpu


# ---------------------------------------------------------------------------
# Helpers
# ---------------------------------------------------------------------------

def _round_up(n, m):
    return ((n + m - 1) // m) * m


def _vmem_capacity_bytes():
    try:
        return int(pltpu.get_tpu_info().vmem_capacity_bytes)
    except Exception:
        return 128 << 20  # v5e/v6e physical VMEM; conservative default


def _pick_tile_b(B, p_in, p_out, p_max, weight_bytes, vmem_cap):
    """Pick a sublane-aligned batch tile and grid length.

    - Keeps (resident weights + 2x in tile + 2x out tile + activation temps)
      under ~85% of VMEM (v7x has 64 MiB/TC, v5e/v6e have 128 MiB).
    - Minimizes last-tile padding waste (TILE_B derived from ceil(B/n_tiles)).
    - Forces >= 2 grid steps for B >= 16 so the "parallel" axis can shard
      across v7x's 2 TensorCores (negligible cost on 1-TC chips).
    """
    B8 = _round_up(max(B, 1), 8)
    max_tile = 512
    if vmem_cap <= (64 << 20) and p_max >= 1024:
        max_tile = 256

    def footprint(t):
        return (weight_bytes
                + 2 * t * p_in * 4       # double-buffered x tile
                + 2 * t * p_out * 4      # double-buffered out tile
                + 6 * t * p_max * 4)     # activation temporaries (x, v, g, ...)

    while max_tile > 8 and footprint(max_tile) > int(0.85 * vmem_cap):
        max_tile //= 2
    max_tile = max(max_tile, 8)

    n_tiles = max(pl.cdiv(B8, max_tile), 2 if B >= 16 else 1)
    tile_b = _round_up(pl.cdiv(B8, n_tiles), 8)
    n_tiles = pl.cdiv(B8, tile_b)
    return tile_b, n_tiles


# ---------------------------------------------------------------------------
# Fused Pallas kernel
# ---------------------------------------------------------------------------

def _make_fused_dense_kernel(n_gates, n_values, sigmoid_output):
    """Kernel computing the whole Dense.forward chain on one batch tile.

    Ref layout:
      x_ref, wg_0, bg_0, ..., wg_{ng-1}, bg_{ng-1},
             wv_0, bv_0, ..., wv_{nv-1}, bv_{nv-1}, o_ref
    Each weight is padded per-layer to (round_up(in,128), round_up(out,128));
    padded weight rows/cols and padded input lanes are 0, so the padded lanes
    of the activation stay exactly 0 through the chain (the 0.5 from
    sigmoid(0) always multiplies a zeroed value path).
    """

    def kernel(x_ref, *refs):
        gate_refs = refs[: 2 * n_gates]
        value_refs = refs[2 * n_gates: 2 * n_gates + 2 * n_values]
        o_ref = refs[-1]

        def wg(i): return gate_refs[2 * i]
        def bg(i): return gate_refs[2 * i + 1]
        def wv(i): return value_refs[2 * i]
        def bv(i): return value_refs[2 * i + 1]

        def linear(x, w_ref, b_ref):
            w = w_ref[...]
            # Cast activation to the weight dtype at the MXU input (no-op for
            # f32 weights); accumulate in f32, elementwise math stays f32.
            return jnp.dot(x.astype(w.dtype), w,
                           preferred_element_type=jnp.float32) + b_ref[...]

        x = x_ref[...].astype(jnp.float32)

        # Step 0: gate-only (value path is identity).
        x = x * jax.nn.sigmoid(linear(x, wg(0), bg(0)))

        # Middle gated-linear steps (statically unrolled; per-layer widths).
        for i in range(n_gates - 2):
            v = linear(x, wv(i), bv(i))
            g = linear(x, wg(i + 1), bg(i + 1))
            x = v * jax.nn.sigmoid(g)

        # Final step.
        sig = jax.nn.sigmoid(linear(x, wg(n_gates - 1), bg(n_gates - 1)))
        if sigmoid_output:
            x = sig
        else:
            x = sig * linear(x, wv(n_values - 1), bv(n_values - 1))

        o_ref[...] = x.astype(o_ref.dtype)

    return kernel


# ---------------------------------------------------------------------------
# Parameter preparation (done ONCE, hoisted out of the per-call path)
# ---------------------------------------------------------------------------

def prepare_dense_params(layers, gates, *, sigmoid_output=False,
                         param_dtype=jnp.float32):
    """Pad each weight/bias to per-layer lane-dense widths and flatten them
    in the order the kernel expects.  Call once at module-build time."""

    def pad_w(w):
        ki, no = w.shape
        kp, npad = _round_up(ki, 128), _round_up(no, 128)
        return jnp.zeros((kp, npad), param_dtype).at[:ki, :no].set(
            w.astype(param_dtype))

    def pad_b(b):
        b2 = jnp.asarray(b, jnp.float32).reshape(1, -1)
        npad = _round_up(b2.shape[1], 128)
        return jnp.zeros((1, npad), jnp.float32).at[:, :b2.shape[1]].set(b2)

    gw = [pad_w(w) for w, _ in gates]
    gb = [pad_b(b) for _, b in gates]
    vw = [pad_w(w) for w, _ in layers]
    vb = [pad_b(b) for _, b in layers]

    din = gates[0][0].shape[0]
    dout = gates[-1][0].shape[1]
    p_in = _round_up(din, 128)
    p_out = _round_up(dout, 128)
    p_max = max([a.shape[1] for a in gw] + [a.shape[1] for a in vw] + [p_in])

    weight_args = []
    for w, b in zip(gw, gb):
        weight_args += [w, b]
    for w, b in zip(vw, vb):
        weight_args += [w, b]

    weight_bytes = sum(int(a.size) * a.dtype.itemsize for a in weight_args)

    return dict(
        weight_args=tuple(weight_args),
        n_gates=len(gates),
        n_values=len(layers),
        sigmoid_output=sigmoid_output,
        din=din, dout=dout,
        p_in=p_in, p_out=p_out, p_max=p_max,
        weight_bytes=weight_bytes,
    )


# ---------------------------------------------------------------------------
# Forward pass
# ---------------------------------------------------------------------------

def dense_forward(x, params):
    """Fused Pallas forward pass.  x: (B, input_size) f32."""
    B, Din = x.shape
    assert Din == params["din"], (Din, params["din"])
    p_in, p_out, p_max = params["p_in"], params["p_out"], params["p_max"]
    dout = params["dout"]
    weight_args = params["weight_args"]

    vmem_cap = _vmem_capacity_bytes()
    tile_b, n_tiles = _pick_tile_b(B, p_in, p_out, p_max,
                                   params["weight_bytes"], vmem_cap)
    b_pad = tile_b * n_tiles

    xf = x.astype(jnp.float32)
    if b_pad == B and p_in == Din:
        x_p = xf
    else:
        x_p = jnp.zeros((b_pad, p_in), jnp.float32).at[:B, :Din].set(xf)

    # Scoped-VMEM budget: single-buffered resident weights + double-buffered
    # x/out tiles + a handful of (tile_b, p_max) f32 activation temporaries.
    vmem_limit = (params["weight_bytes"]
                  + 2 * tile_b * p_in * 4
                  + 2 * tile_b * p_out * 4
                  + 8 * tile_b * p_max * 4
                  + (2 << 20))
    vmem_limit = int(min(max(vmem_limit, 32 << 20), int(0.9 * vmem_cap)))

    kernel = _make_fused_dense_kernel(params["n_gates"], params["n_values"],
                                      params["sigmoid_output"])

    def run(weight_pipeline_mode):
        def const_spec(a):
            # Constant index_map: the block never changes across the grid, so
            # it is DMA'd once and stays resident across batch tiles.
            if weight_pipeline_mode is None:
                return pl.BlockSpec(a.shape, lambda i: (0,) * a.ndim)
            return pl.BlockSpec(a.shape, lambda i: (0,) * a.ndim,
                                pipeline_mode=weight_pipeline_mode)

        in_specs = [pl.BlockSpec((tile_b, p_in), lambda i: (i, 0))]
        in_specs += [const_spec(a) for a in weight_args]

        return pl.pallas_call(
            kernel,
            out_shape=jax.ShapeDtypeStruct((b_pad, p_out), x.dtype),
            grid=(n_tiles,),
            in_specs=in_specs,
            out_specs=pl.BlockSpec((tile_b, p_out), lambda i: (i, 0)),
            compiler_params=pltpu.CompilerParams(
                dimension_semantics=("parallel",),
                vmem_limit_bytes=vmem_limit),
        )(x_p, *weight_args)

    try:
        # Single-buffer the constant weight slabs (they never change block).
        out = run(pl.Buffered(1))
    except Exception:
        # Fallback: default pipelining if Buffered(1) is rejected.
        out = run(None)

    if b_pad == B and p_out == dout:
        return out
    return out[:B, :dout]


# ---------------------------------------------------------------------------
# Parameter construction (deterministic, mirrors Dense.__init__ shapes)
# ---------------------------------------------------------------------------

def _make_linear(key, in_features, out_features):
    # Same bound as torch.nn.Linear default init: U(-1/sqrt(in), 1/sqrt(in)).
    kw, kb = jax.random.split(key)
    bound = 1.0 / math.sqrt(in_features)
    w = jax.random.uniform(kw, (in_features, out_features), jnp.float32,
                           minval=-bound, maxval=bound)
    b = jax.random.uniform(kb, (1, out_features), jnp.float32,
                           minval=-bound, maxval=bound)
    return w, b


def build_dense_params(key, input_size, output_size, n_layers,
                       sigmoid_output=False):
    ratio = output_size / input_size
    intermediate_size = input_size
    gates, layers = [], []

    key, k = jax.random.split(key)
    gates.append(_make_linear(k, intermediate_size, intermediate_size))
    for i in range(n_layers):
        next_size = int(input_size * ratio ** ((i + 1) / n_layers))
        if i == n_layers - 1:
            next_size = output_size
        if i == n_layers - 1:
            key, k = jax.random.split(key)
            gates.append(_make_linear(k, intermediate_size, next_size))
            if not sigmoid_output:
                key, k = jax.random.split(key)
                layers.append(_make_linear(k, intermediate_size, next_size))
        else:
            key, k = jax.random.split(key)
            layers.append(_make_linear(k, intermediate_size, next_size))
            key, k = jax.random.split(key)
            gates.append(_make_linear(k, intermediate_size, next_size))
        intermediate_size = next_size
    return layers, gates


# ---------------------------------------------------------------------------
# Pure-JAX reference (matches Dense.forward)
# ---------------------------------------------------------------------------

def dense_forward_ref(x, layers, gates, sigmoid_output=False):
    def lin(x, p):
        w, b = p
        return x @ w + b
    x = x * jax.nn.sigmoid(lin(x, gates[0]))
    for i in range(len(gates) - 2):
        x = lin(x, layers[i]) * jax.nn.sigmoid(lin(x, gates[i + 1]))
    sig = jax.nn.sigmoid(lin(x, gates[-1]))
    if not sigmoid_output:
        x = sig * lin(x, layers[-1])
    else:
        x = sig
    return x


# ---------------------------------------------------------------------------
# Demo
# ---------------------------------------------------------------------------

if __name__ == "__main__":
    input_size, output_size, n_layers = 32, 16, 3
    batch = 8

    key = jax.random.PRNGKey(0)
    kx, kp1, kp2 = jax.random.split(key, 3)
    x = jax.random.normal(kx, (batch, input_size), jnp.float32)

    # Case 1: sigmoid_output=False (gated final layer).
    layers, gates = build_dense_params(kp1, input_size, output_size, n_layers,
                                       sigmoid_output=False)
    params = prepare_dense_params(layers, gates, sigmoid_output=False)
    out = jax.block_until_ready(dense_forward(x, params))
    ref = dense_forward_ref(x, layers, gates, sigmoid_output=False)
    assert out.shape == (batch, output_size), out.shape
    assert jnp.allclose(out, ref, rtol=1e-3, atol=1e-3), \
        float(jnp.max(jnp.abs(out - ref)))

    # Case 2: sigmoid_output=True (sigmoid-only final layer).
    layers2, gates2 = build_dense_params(kp2, input_size, output_size, n_layers,
                                         sigmoid_output=True)
    params2 = prepare_dense_params(layers2, gates2, sigmoid_output=True)
    out2 = jax.block_until_ready(dense_forward(x, params2))
    ref2 = dense_forward_ref(x, layers2, gates2, sigmoid_output=True)
    assert out2.shape == (batch, output_size), out2.shape
    assert jnp.allclose(out2, ref2, rtol=1e-3, atol=1e-3), \
        float(jnp.max(jnp.abs(out2 - ref2)))

    print("KERNEL_OK")
</pallas_src>

<mosaic_0001>
module attributes {stable_mosaic.version = 11 : i64} {
  func.func @kernel(%arg0: i32, %arg1: memref<8x128xf32, #tpu.memory_space<vmem>>, %arg2: memref<128x128xf32, #tpu.memory_space<vmem>>, %arg3: memref<1x128xf32, #tpu.memory_space<vmem>>, %arg4: memref<128x128xf32, #tpu.memory_space<vmem>>, %arg5: memref<1x128xf32, #tpu.memory_space<vmem>>, %arg6: memref<128x128xf32, #tpu.memory_space<vmem>>, %arg7: memref<1x128xf32, #tpu.memory_space<vmem>>, %arg8: memref<128x128xf32, #tpu.memory_space<vmem>>, %arg9: memref<1x128xf32, #tpu.memory_space<vmem>>, %arg10: memref<128x128xf32, #tpu.memory_space<vmem>>, %arg11: memref<1x128xf32, #tpu.memory_space<vmem>>, %arg12: memref<128x128xf32, #tpu.memory_space<vmem>>, %arg13: memref<1x128xf32, #tpu.memory_space<vmem>>, %arg14: memref<128x128xf32, #tpu.memory_space<vmem>>, %arg15: memref<1x128xf32, #tpu.memory_space<vmem>>, %arg16: memref<8x128xf32, #tpu.memory_space<vmem>>) attributes {dimension_semantics = [#tpu.dimension_semantics<parallel>], iteration_bounds = array<i64: 1>, scalar_prefetch = 0 : i64, scratch_operands = 0 : i64, tpu.core_type = #tpu.core_type<tc>, window_params = [{transform_indices = @transform_0, window_bounds = array<i64: 8, 128>}, {pipeline_mode = #tpu.pipeline_mode<synchronous>, transform_indices = @transform_1, window_bounds = array<i64: 128, 128>}, {pipeline_mode = #tpu.pipeline_mode<synchronous>, transform_indices = @transform_2, window_bounds = array<i64: 1, 128>}, {pipeline_mode = #tpu.pipeline_mode<synchronous>, transform_indices = @transform_3, window_bounds = array<i64: 128, 128>}, {pipeline_mode = #tpu.pipeline_mode<synchronous>, transform_indices = @transform_4, window_bounds = array<i64: 1, 128>}, {pipeline_mode = #tpu.pipeline_mode<synchronous>, transform_indices = @transform_5, window_bounds = array<i64: 128, 128>}, {pipeline_mode = #tpu.pipeline_mode<synchronous>, transform_indices = @transform_6, window_bounds = array<i64: 1, 128>}, {pipeline_mode = #tpu.pipeline_mode<synchronous>, transform_indices = @transform_7, window_bounds = array<i64: 128, 128>}, {pipeline_mode = #tpu.pipeline_mode<synchronous>, transform_indices = @transform_8, window_bounds = array<i64: 1, 128>}, {pipeline_mode = #tpu.pipeline_mode<synchronous>, transform_indices = @transform_9, window_bounds = array<i64: 128, 128>}, {pipeline_mode = #tpu.pipeline_mode<synchronous>, transform_indices = @transform_10, window_bounds = array<i64: 1, 128>}, {pipeline_mode = #tpu.pipeline_mode<synchronous>, transform_indices = @transform_11, window_bounds = array<i64: 128, 128>}, {pipeline_mode = #tpu.pipeline_mode<synchronous>, transform_indices = @transform_12, window_bounds = array<i64: 1, 128>}, {pipeline_mode = #tpu.pipeline_mode<synchronous>, transform_indices = @transform_13, window_bounds = array<i64: 128, 128>}, {pipeline_mode = #tpu.pipeline_mode<synchronous>, transform_indices = @transform_14, window_bounds = array<i64: 1, 128>}, {transform_indices = @transform_15, window_bounds = array<i64: 8, 128>}]} {
    %c0 = arith.constant 0 : index
    %c0_0 = arith.constant 0 : index
    %0 = vector.load %arg1[%c0, %c0_0] : memref<8x128xf32, #tpu.memory_space<vmem>>, vector<8x128xf32>
    %c0_1 = arith.constant 0 : index
    %c0_2 = arith.constant 0 : index
    %1 = vector.load %arg2[%c0_1, %c0_2] : memref<128x128xf32, #tpu.memory_space<vmem>>, vector<128x128xf32>
    %cst = arith.constant dense<0.000000e+00> : vector<8x128xf32>
    %2 = tpu.matmul %0, %1, %cst {dimension_numbers = #tpu.dot_dimension_numbers<[1], [0], [0], [1], [0, 0, 1, 1], [], []>} : vector<8x128xf32>, vector<128x128xf32>, vector<8x128xf32> -> vector<8x128xf32>
    %c0_3 = arith.constant 0 : index
    %c0_4 = arith.constant 0 : index
    %3 = vector.load %arg3[%c0_3, %c0_4] : memref<1x128xf32, #tpu.memory_space<vmem>>, vector<1x128xf32>
    %4 = vector.broadcast %3 : vector<1x128xf32> to vector<8x128xf32>
    %5 = arith.addf %2, %4 : vector<8x128xf32>
    %6 = arith.negf %5 : vector<8x128xf32>
    %7 = math.exp %6 : vector<8x128xf32>
    %cst_5 = arith.constant 1.000000e+00 : f32
    %8 = vector.broadcast %cst_5 : f32 to vector<8x128xf32>
    %9 = arith.addf %8, %7 : vector<8x128xf32>
    %10 = arith.divf %8, %9 : vector<8x128xf32>
    %11 = arith.mulf %0, %10 : vector<8x128xf32>
    %c0_6 = arith.constant 0 : index
    %c0_7 = arith.constant 0 : index
    %12 = vector.load %arg10[%c0_6, %c0_7] : memref<128x128xf32, #tpu.memory_space<vmem>>, vector<128x128xf32>
    %cst_8 = arith.constant dense<0.000000e+00> : vector<8x128xf32>
    %13 = tpu.matmul %11, %12, %cst_8 {dimension_numbers = #tpu.dot_dimension_numbers<[1], [0], [0], [1], [0, 0, 1, 1], [], []>} : vector<8x128xf32>, vector<128x128xf32>, vector<8x128xf32> -> vector<8x128xf32>
    %c0_9 = arith.constant 0 : index
    %c0_10 = arith.constant 0 : index
    %14 = vector.load %arg11[%c0_9, %c0_10] : memref<1x128xf32, #tpu.memory_space<vmem>>, vector<1x128xf32>
    %15 = vector.broadcast %14 : vector<1x128xf32> to vector<8x128xf32>
    %16 = arith.addf %13, %15 : vector<8x128xf32>
    %c0_11 = arith.constant 0 : index
    %c0_12 = arith.constant 0 : index
    %17 = vector.load %arg4[%c0_11, %c0_12] : memref<128x128xf32, #tpu.memory_space<vmem>>, vector<128x128xf32>
    %cst_13 = arith.constant dense<0.000000e+00> : vector<8x128xf32>
    %18 = tpu.matmul %11, %17, %cst_13 {dimension_numbers = #tpu.dot_dimension_numbers<[1], [0], [0], [1], [0, 0, 1, 1], [], []>} : vector<8x128xf32>, vector<128x128xf32>, vector<8x128xf32> -> vector<8x128xf32>
    %c0_14 = arith.constant 0 : index
    %c0_15 = arith.constant 0 : index
    %19 = vector.load %arg5[%c0_14, %c0_15] : memref<1x128xf32, #tpu.memory_space<vmem>>, vector<1x128xf32>
    %20 = vector.broadcast %19 : vector<1x128xf32> to vector<8x128xf32>
    %21 = arith.addf %18, %20 : vector<8x128xf32>
    %22 = arith.negf %21 : vector<8x128xf32>
    %23 = math.exp %22 : vector<8x128xf32>
    %cst_16 = arith.constant 1.000000e+00 : f32
    %24 = vector.broadcast %cst_16 : f32 to vector<8x128xf32>
    %25 = arith.addf %24, %23 : vector<8x128xf32>
    %26 = arith.divf %24, %25 : vector<8x128xf32>
    %27 = arith.mulf %16, %26 : vector<8x128xf32>
    %c0_17 = arith.constant 0 : index
    %c0_18 = arith.constant 0 : index
    %28 = vector.load %arg12[%c0_17, %c0_18] : memref<128x128xf32, #tpu.memory_space<vmem>>, vector<128x128xf32>
    %cst_19 = arith.constant dense<0.000000e+00> : vector<8x128xf32>
    %29 = tpu.matmul %27, %28, %cst_19 {dimension_numbers = #tpu.dot_dimension_numbers<[1], [0], [0], [1], [0, 0, 1, 1], [], []>} : vector<8x128xf32>, vector<128x128xf32>, vector<8x128xf32> -> vector<8x128xf32>
    %c0_20 = arith.constant 0 : index
    %c0_21 = arith.constant 0 : index
    %30 = vector.load %arg13[%c0_20, %c0_21] : memref<1x128xf32, #tpu.memory_space<vmem>>, vector<1x128xf32>
    %31 = vector.broadcast %30 : vector<1x128xf32> to vector<8x128xf32>
    %32 = arith.addf %29, %31 : vector<8x128xf32>
    %c0_22 = arith.constant 0 : index
    %c0_23 = arith.constant 0 : index
    %33 = vector.load %arg6[%c0_22, %c0_23] : memref<128x128xf32, #tpu.memory_space<vmem>>, vector<128x128xf32>
    %cst_24 = arith.constant dense<0.000000e+00> : vector<8x128xf32>
    %34 = tpu.matmul %27, %33, %cst_24 {dimension_numbers = #tpu.dot_dimension_numbers<[1], [0], [0], [1], [0, 0, 1, 1], [], []>} : vector<8x128xf32>, vector<128x128xf32>, vector<8x128xf32> -> vector<8x128xf32>
    %c0_25 = arith.constant 0 : index
    %c0_26 = arith.constant 0 : index
    %35 = vector.load %arg7[%c0_25, %c0_26] : memref<1x128xf32, #tpu.memory_space<vmem>>, vector<1x128xf32>
    %36 = vector.broadcast %35 : vector<1x128xf32> to vector<8x128xf32>
    %37 = arith.addf %34, %36 : vector<8x128xf32>
    %38 = arith.negf %37 : vector<8x128xf32>
    %39 = math.exp %38 : vector<8x128xf32>
    %cst_27 = arith.constant 1.000000e+00 : f32
    %40 = vector.broadcast %cst_27 : f32 to vector<8x128xf32>
    %41 = arith.addf %40, %39 : vector<8x128xf32>
    %42 = arith.divf %40, %41 : vector<8x128xf32>
    %43 = arith.mulf %32, %42 : vector<8x128xf32>
    %c0_28 = arith.constant 0 : index
    %c0_29 = arith.constant 0 : index
    %44 = vector.load %arg8[%c0_28, %c0_29] : memref<128x128xf32, #tpu.memory_space<vmem>>, vector<128x128xf32>
    %cst_30 = arith.constant dense<0.000000e+00> : vector<8x128xf32>
    %45 = tpu.matmul %43, %44, %cst_30 {dimension_numbers = #tpu.dot_dimension_numbers<[1], [0], [0], [1], [0, 0, 1, 1], [], []>} : vector<8x128xf32>, vector<128x128xf32>, vector<8x128xf32> -> vector<8x128xf32>
    %c0_31 = arith.constant 0 : index
    %c0_32 = arith.constant 0 : index
    %46 = vector.load %arg9[%c0_31, %c0_32] : memref<1x128xf32, #tpu.memory_space<vmem>>, vector<1x128xf32>
    %47 = vector.broadcast %46 : vector<1x128xf32> to vector<8x128xf32>
    %48 = arith.addf %45, %47 : vector<8x128xf32>
    %49 = arith.negf %48 : vector<8x128xf32>
    %50 = math.exp %49 : vector<8x128xf32>
    %cst_33 = arith.constant 1.000000e+00 : f32
    %51 = vector.broadcast %cst_33 : f32 to vector<8x128xf32>
    %52 = arith.addf %51, %50 : vector<8x128xf32>
    %53 = arith.divf %51, %52 : vector<8x128xf32>
    %c0_34 = arith.constant 0 : index
    %c0_35 = arith.constant 0 : index
    %54 = vector.load %arg14[%c0_34, %c0_35] : memref<128x128xf32, #tpu.memory_space<vmem>>, vector<128x128xf32>
    %cst_36 = arith.constant dense<0.000000e+00> : vector<8x128xf32>
    %55 = tpu.matmul %43, %54, %cst_36 {dimension_numbers = #tpu.dot_dimension_numbers<[1], [0], [0], [1], [0, 0, 1, 1], [], []>} : vector<8x128xf32>, vector<128x128xf32>, vector<8x128xf32> -> vector<8x128xf32>
    %c0_37 = arith.constant 0 : index
    %c0_38 = arith.constant 0 : index
    %56 = vector.load %arg15[%c0_37, %c0_38] : memref<1x128xf32, #tpu.memory_space<vmem>>, vector<1x128xf32>
    %57 = vector.broadcast %56 : vector<1x128xf32> to vector<8x128xf32>
    %58 = arith.addf %55, %57 : vector<8x128xf32>
    %59 = arith.mulf %53, %58 : vector<8x128xf32>
    %c0_39 = arith.constant 0 : index
    %c0_40 = arith.constant 0 : index
    %60 = vector.load %arg16[%c0_39, %c0_40] : memref<8x128xf32, #tpu.memory_space<vmem>>, vector<8x128xf32>
    tpu.vector_store %arg16[%c0_39, %c0_40], %59 {strides = array<i32>} : memref<8x128xf32, #tpu.memory_space<vmem>>, vector<8x128xf32>,
    return
  }
  func.func @transform_0(%arg0: i32) -> (i32, i32) {
    %c0_i32 = arith.constant 0 : i32
    %c0_i32_0 = arith.constant 0 : i32
    return %arg0, %c0_i32 : i32, i32
  }
  func.func @transform_1(%arg0: i32) -> (i32, i32) {
    %c0_i32 = arith.constant 0 : i32
    %c0_i32_0 = arith.constant 0 : i32
    %c0_i32_1 = arith.constant 0 : i32
    return %c0_i32, %c0_i32_0 : i32, i32
  }
  func.func @transform_2(%arg0: i32) -> (i32, i32) {
    %c0_i32 = arith.constant 0 : i32
    %c0_i32_0 = arith.constant 0 : i32
    %c0_i32_1 = arith.constant 0 : i32
    return %c0_i32, %c0_i32_0 : i32, i32
  }
  func.func @transform_3(%arg0: i32) -> (i32, i32) {
    %c0_i32 = arith.constant 0 : i32
    %c0_i32_0 = arith.constant 0 : i32
    %c0_i32_1 = arith.constant 0 : i32
    return %c0_i32, %c0_i32_0 : i32, i32
  }
  func.func @transform_4(%arg0: i32) -> (i32, i32) {
    %c0_i32 = arith.constant 0 : i32
    %c0_i32_0 = arith.constant 0 : i32
    %c0_i32_1 = arith.constant 0 : i32
    return %c0_i32, %c0_i32_0 : i32, i32
  }
  func.func @transform_5(%arg0: i32) -> (i32, i32) {
    %c0_i32 = arith.constant 0 : i32
    %c0_i32_0 = arith.constant 0 : i32
    %c0_i32_1 = arith.constant 0 : i32
    return %c0_i32, %c0_i32_0 : i32, i32
  }
  func.func @transform_6(%arg0: i32) -> (i32, i32) {
    %c0_i32 = arith.constant 0 : i32
    %c0_i32_0 = arith.constant 0 : i32
    %c0_i32_1 = arith.constant 0 : i32
    return %c0_i32, %c0_i32_0 : i32, i32
  }
  func.func @transform_7(%arg0: i32) -> (i32, i32) {
    %c0_i32 = arith.constant 0 : i32
    %c0_i32_0 = arith.constant 0 : i32
    %c0_i32_1 = arith.constant 0 : i32
    return %c0_i32, %c0_i32_0 : i32, i32
  }
  func.func @transform_8(%arg0: i32) -> (i32, i32) {
    %c0_i32 = arith.constant 0 : i32
    %c0_i32_0 = arith.constant 0 : i32
    %c0_i32_1 = arith.constant 0 : i32
    return %c0_i32, %c0_i32_0 : i32, i32
  }
  func.func @transform_9(%arg0: i32) -> (i32, i32) {
    %c0_i32 = arith.constant 0 : i32
    %c0_i32_0 = arith.constant 0 : i32
    %c0_i32_1 = arith.constant 0 : i32
    return %c0_i32, %c0_i32_0 : i32, i32
  }
  func.func @transform_10(%arg0: i32) -> (i32, i32) {
    %c0_i32 = arith.constant 0 : i32
    %c0_i32_0 = arith.constant 0 : i32
    %c0_i32_1 = arith.constant 0 : i32
    return %c0_i32, %c0_i32_0 : i32, i32
  }
  func.func @transform_11(%arg0: i32) -> (i32, i32) {
    %c0_i32 = arith.constant 0 : i32
    %c0_i32_0 = arith.constant 0 : i32
    %c0_i32_1 = arith.constant 0 : i32
    return %c0_i32, %c0_i32_0 : i32, i32
  }
  func.func @transform_12(%arg0: i32) -> (i32, i32) {
    %c0_i32 = arith.constant 0 : i32
    %c0_i32_0 = arith.constant 0 : i32
    %c0_i32_1 = arith.constant 0 : i32
    return %c0_i32, %c0_i32_0 : i32, i32
  }
  func.func @transform_13(%arg0: i32) -> (i32, i32) {
    %c0_i32 = arith.constant 0 : i32
    %c0_i32_0 = arith.constant 0 : i32
    %c0_i32_1 = arith.constant 0 : i32
    return %c0_i32, %c0_i32_0 : i32, i32
  }
  func.func @transform_14(%arg0: i32) -> (i32, i32) {
    %c0_i32 = arith.constant 0 : i32
    %c0_i32_0 = arith.constant 0 : i32
    %c0_i32_1 = arith.constant 0 : i32
    return %c0_i32, %c0_i32_0 : i32, i32
  }
  func.func @transform_15(%arg0: i32) -> (i32, i32) {
    %c0_i32 = arith.constant 0 : i32
    %c0_i32_0 = arith.constant 0 : i32
    return %arg0, %c0_i32 : i32, i32
  }
}

module attributes {stable_mosaic.version = 11 : i64} {
  func.func @kernel(%arg0: i32, %arg1: memref<8x128xf32, #tpu.memory_space<vmem>>, %arg2: memref<128x128xf32, #tpu.memory_space<vmem>>, %arg3: memref<1x128xf32, #tpu.memory_space<vmem>>, %arg4: memref<128x128xf32, #tpu.memory_space<vmem>>, %arg5: memref<1x128xf32, #tpu.memory_space<vmem>>, %arg6: memref<128x128xf32, #tpu.memory_space<vmem>>, %arg7: memref<1x128xf32, #tpu.memory_space<vmem>>, %arg8: memref<128x128xf32, #tpu.memory_space<vmem>>, %arg9: memref<1x128xf32, #tpu.memory_space<vmem>>, %arg10: memref<128x128xf32, #tpu.memory_space<vmem>>, %arg11: memref<1x128xf32, #tpu.memory_space<vmem>>, %arg12: memref<128x128xf32, #tpu.memory_space<vmem>>, %arg13: memref<1x128xf32, #tpu.memory_space<vmem>>, %arg14: memref<128x128xf32, #tpu.memory_space<vmem>>, %arg15: memref<1x128xf32, #tpu.memory_space<vmem>>, %arg16: memref<8x128xf32, #tpu.memory_space<vmem>>) attributes {dimension_semantics = [#tpu.dimension_semantics<parallel>], iteration_bounds = array<i64: 1>, scalar_prefetch = 0 : i64, scratch_operands = 0 : i64, tpu.core_type = #tpu.core_type<tc>, window_params = [{transform_indices = @transform_0, window_bounds = array<i64: 8, 128>}, {pipeline_mode = #tpu.pipeline_mode<synchronous>, transform_indices = @transform_1, window_bounds = array<i64: 128, 128>}, {pipeline_mode = #tpu.pipeline_mode<synchronous>, transform_indices = @transform_2, window_bounds = array<i64: 1, 128>}, {pipeline_mode = #tpu.pipeline_mode<synchronous>, transform_indices = @transform_3, window_bounds = array<i64: 128, 128>}, {pipeline_mode = #tpu.pipeline_mode<synchronous>, transform_indices = @transform_4, window_bounds = array<i64: 1, 128>}, {pipeline_mode = #tpu.pipeline_mode<synchronous>, transform_indices = @transform_5, window_bounds = array<i64: 128, 128>}, {pipeline_mode = #tpu.pipeline_mode<synchronous>, transform_indices = @transform_6, window_bounds = array<i64: 1, 128>}, {pipeline_mode = #tpu.pipeline_mode<synchronous>, transform_indices = @transform_7, window_bounds = array<i64: 128, 128>}, {pipeline_mode = #tpu.pipeline_mode<synchronous>, transform_indices = @transform_8, window_bounds = array<i64: 1, 128>}, {pipeline_mode = #tpu.pipeline_mode<synchronous>, transform_indices = @transform_9, window_bounds = array<i64: 128, 128>}, {pipeline_mode = #tpu.pipeline_mode<synchronous>, transform_indices = @transform_10, window_bounds = array<i64: 1, 128>}, {pipeline_mode = #tpu.pipeline_mode<synchronous>, transform_indices = @transform_11, window_bounds = array<i64: 128, 128>}, {pipeline_mode = #tpu.pipeline_mode<synchronous>, transform_indices = @transform_12, window_bounds = array<i64: 1, 128>}, {pipeline_mode = #tpu.pipeline_mode<synchronous>, transform_indices = @transform_13, window_bounds = array<i64: 128, 128>}, {pipeline_mode = #tpu.pipeline_mode<synchronous>, transform_indices = @transform_14, window_bounds = array<i64: 1, 128>}, {transform_indices = @transform_15, window_bounds = array<i64: 8, 128>}]} {
    %c0 = arith.constant 0 : index
    %c0_0 = arith.constant 0 : index
    %0 = vector.load %arg1[%c0, %c0_0] : memref<8x128xf32, #tpu.memory_space<vmem>>, vector<8x128xf32>
    %c0_1 = arith.constant 0 : index
    %c0_2 = arith.constant 0 : index
    %1 = vector.load %arg2[%c0_1, %c0_2] : memref<128x128xf32, #tpu.memory_space<vmem>>, vector<128x128xf32>
    %cst = arith.constant dense<0.000000e+00> : vector<8x128xf32>
    %2 = tpu.matmul %0, %1, %cst {dimension_numbers = #tpu.dot_dimension_numbers<[1], [0], [0], [1], [0, 0, 1, 1], [], []>} : vector<8x128xf32>, vector<128x128xf32>, vector<8x128xf32> -> vector<8x128xf32>
    %c0_3 = arith.constant 0 : index
    %c0_4 = arith.constant 0 : index
    %3 = vector.load %arg3[%c0_3, %c0_4] : memref<1x128xf32, #tpu.memory_space<vmem>>, vector<1x128xf32>
    %4 = vector.broadcast %3 : vector<1x128xf32> to vector<8x128xf32>
    %5 = arith.addf %2, %4 : vector<8x128xf32>
    %6 = arith.negf %5 : vector<8x128xf32>
    %7 = math.exp %6 : vector<8x128xf32>
    %cst_5 = arith.constant 1.000000e+00 : f32
    %8 = vector.broadcast %cst_5 : f32 to vector<8x128xf32>
    %9 = arith.addf %8, %7 : vector<8x128xf32>
    %10 = arith.divf %8, %9 : vector<8x128xf32>
    %11 = arith.mulf %0, %10 : vector<8x128xf32>
    %c0_6 = arith.constant 0 : index
    %c0_7 = arith.constant 0 : index
    %12 = vector.load %arg10[%c0_6, %c0_7] : memref<128x128xf32, #tpu.memory_space<vmem>>, vector<128x128xf32>
    %cst_8 = arith.constant dense<0.000000e+00> : vector<8x128xf32>
    %13 = tpu.matmul %11, %12, %cst_8 {dimension_numbers = #tpu.dot_dimension_numbers<[1], [0], [0], [1], [0, 0, 1, 1], [], []>} : vector<8x128xf32>, vector<128x128xf32>, vector<8x128xf32> -> vector<8x128xf32>
    %c0_9 = arith.constant 0 : index
    %c0_10 = arith.constant 0 : index
    %14 = vector.load %arg11[%c0_9, %c0_10] : memref<1x128xf32, #tpu.memory_space<vmem>>, vector<1x128xf32>
    %15 = vector.broadcast %14 : vector<1x128xf32> to vector<8x128xf32>
    %16 = arith.addf %13, %15 : vector<8x128xf32>
    %c0_11 = arith.constant 0 : index
    %c0_12 = arith.constant 0 : index
    %17 = vector.load %arg4[%c0_11, %c0_12] : memref<128x128xf32, #tpu.memory_space<vmem>>, vector<128x128xf32>
    %cst_13 = arith.constant dense<0.000000e+00> : vector<8x128xf32>
    %18 = tpu.matmul %11, %17, %cst_13 {dimension_numbers = #tpu.dot_dimension_numbers<[1], [0], [0], [1], [0, 0, 1, 1], [], []>} : vector<8x128xf32>, vector<128x128xf32>, vector<8x128xf32> -> vector<8x128xf32>
    %c0_14 = arith.constant 0 : index
    %c0_15 = arith.constant 0 : index
    %19 = vector.load %arg5[%c0_14, %c0_15] : memref<1x128xf32, #tpu.memory_space<vmem>>, vector<1x128xf32>
    %20 = vector.broadcast %19 : vector<1x128xf32> to vector<8x128xf32>
    %21 = arith.addf %18, %20 : vector<8x128xf32>
    %22 = arith.negf %21 : vector<8x128xf32>
    %23 = math.exp %22 : vector<8x128xf32>
    %cst_16 = arith.constant 1.000000e+00 : f32
    %24 = vector.broadcast %cst_16 : f32 to vector<8x128xf32>
    %25 = arith.addf %24, %23 : vector<8x128xf32>
    %26 = arith.divf %24, %25 : vector<8x128xf32>
    %27 = arith.mulf %16, %26 : vector<8x128xf32>
    %c0_17 = arith.constant 0 : index
    %c0_18 = arith.constant 0 : index
    %28 = vector.load %arg12[%c0_17, %c0_18] : memref<128x128xf32, #tpu.memory_space<vmem>>, vector<128x128xf32>
    %cst_19 = arith.constant dense<0.000000e+00> : vector<8x128xf32>
    %29 = tpu.matmul %27, %28, %cst_19 {dimension_numbers = #tpu.dot_dimension_numbers<[1], [0], [0], [1], [0, 0, 1, 1], [], []>} : vector<8x128xf32>, vector<128x128xf32>, vector<8x128xf32> -> vector<8x128xf32>
    %c0_20 = arith.constant 0 : index
    %c0_21 = arith.constant 0 : index
    %30 = vector.load %arg13[%c0_20, %c0_21] : memref<1x128xf32, #tpu.memory_space<vmem>>, vector<1x128xf32>
    %31 = vector.broadcast %30 : vector<1x128xf32> to vector<8x128xf32>
    %32 = arith.addf %29, %31 : vector<8x128xf32>
    %c0_22 = arith.constant 0 : index
    %c0_23 = arith.constant 0 : index
    %33 = vector.load %arg6[%c0_22, %c0_23] : memref<128x128xf32, #tpu.memory_space<vmem>>, vector<128x128xf32>
    %cst_24 = arith.constant dense<0.000000e+00> : vector<8x128xf32>
    %34 = tpu.matmul %27, %33, %cst_24 {dimension_numbers = #tpu.dot_dimension_numbers<[1], [0], [0], [1], [0, 0, 1, 1], [], []>} : vector<8x128xf32>, vector<128x128xf32>, vector<8x128xf32> -> vector<8x128xf32>
    %c0_25 = arith.constant 0 : index
    %c0_26 = arith.constant 0 : index
    %35 = vector.load %arg7[%c0_25, %c0_26] : memref<1x128xf32, #tpu.memory_space<vmem>>, vector<1x128xf32>
    %36 = vector.broadcast %35 : vector<1x128xf32> to vector<8x128xf32>
    %37 = arith.addf %34, %36 : vector<8x128xf32>
    %38 = arith.negf %37 : vector<8x128xf32>
    %39 = math.exp %38 : vector<8x128xf32>
    %cst_27 = arith.constant 1.000000e+00 : f32
    %40 = vector.broadcast %cst_27 : f32 to vector<8x128xf32>
    %41 = arith.addf %40, %39 : vector<8x128xf32>
    %42 = arith.divf %40, %41 : vector<8x128xf32>
    %43 = arith.mulf %32, %42 : vector<8x128xf32>
    %c0_28 = arith.constant 0 : index
    %c0_29 = arith.constant 0 : index
    %44 = vector.load %arg8[%c0_28, %c0_29] : memref<128x128xf32, #tpu.memory_space<vmem>>, vector<128x128xf32>
    %cst_30 = arith.constant dense<0.000000e+00> : vector<8x128xf32>
    %45 = tpu.matmul %43, %44, %cst_30 {dimension_numbers = #tpu.dot_dimension_numbers<[1], [0], [0], [1], [0, 0, 1, 1], [], []>} : vector<8x128xf32>, vector<128x128xf32>, vector<8x128xf32> -> vector<8x128xf32>
    %c0_31 = arith.constant 0 : index
    %c0_32 = arith.constant 0 : index
    %46 = vector.load %arg9[%c0_31, %c0_32] : memref<1x128xf32, #tpu.memory_space<vmem>>, vector<1x128xf32>
    %47 = vector.broadcast %46 : vector<1x128xf32> to vector<8x128xf32>
    %48 = arith.addf %45, %47 : vector<8x128xf32>
    %49 = arith.negf %48 : vector<8x128xf32>
    %50 = math.exp %49 : vector<8x128xf32>
    %cst_33 = arith.constant 1.000000e+00 : f32
    %51 = vector.broadcast %cst_33 : f32 to vector<8x128xf32>
    %52 = arith.addf %51, %50 : vector<8x128xf32>
    %53 = arith.divf %51, %52 : vector<8x128xf32>
    %c0_34 = arith.constant 0 : index
    %c0_35 = arith.constant 0 : index
    %54 = vector.load %arg14[%c0_34, %c0_35] : memref<128x128xf32, #tpu.memory_space<vmem>>, vector<128x128xf32>
    %cst_36 = arith.constant dense<0.000000e+00> : vector<8x128xf32>
    %55 = tpu.matmul %43, %54, %cst_36 {dimension_numbers = #tpu.dot_dimension_numbers<[1], [0], [0], [1], [0, 0, 1, 1], [], []>} : vector<8x128xf32>, vector<128x128xf32>, vector<8x128xf32> -> vector<8x128xf32>
    %c0_37 = arith.constant 0 : index
    %c0_38 = arith.constant 0 : index
    %56 = vector.load %arg15[%c0_37, %c0_38] : memref<1x128xf32, #tpu.memory_space<vmem>>, vector<1x128xf32>
    %57 = vector.broadcast %56 : vector<1x128xf32> to vector<8x128xf32>
    %58 = arith.addf %55, %57 : vector<8x128xf32>
    %59 = arith.mulf %53, %58 : vector<8x128xf32>
    %c0_39 = arith.constant 0 : index
    %c0_40 = arith.constant 0 : index
    %60 = vector.load %arg16[%c0_39, %c0_40] : memref<8x128xf32, #tpu.memory_space<vmem>>, vector<8x128xf32>
    tpu.vector_store %arg16[%c0_39, %c0_40], %59 {strides = array<i32>} : memref<8x128xf32, #tpu.memory_space<vmem>>, vector<8x128xf32>,
    return
  }
  func.func @transform_0(%arg0: i32) -> (i32, i32) {
    %c0_i32 = arith.constant 0 : i32
    %c0_i32_0 = arith.constant 0 : i32
    return %arg0, %c0_i32 : i32, i32
  }
  func.func @transform_1(%arg0: i32) -> (i32, i32) {
    %c0_i32 = arith.constant 0 : i32
    %c0_i32_0 = arith.constant 0 : i32
    %c0_i32_1 = arith.constant 0 : i32
    return %c0_i32, %c0_i32_0 : i32, i32
  }
  func.func @transform_2(%arg0: i32) -> (i32, i32) {
    %c0_i32 = arith.constant 0 : i32
    %c0_i32_0 = arith.constant 0 : i32
    %c0_i32_1 = arith.constant 0 : i32
    return %c0_i32, %c0_i32_0 : i32, i32
  }
  func.func @transform_3(%arg0: i32) -> (i32, i32) {
    %c0_i32 = arith.constant 0 : i32
    %c0_i32_0 = arith.constant 0 : i32
    %c0_i32_1 = arith.constant 0 : i32
    return %c0_i32, %c0_i32_0 : i32, i32
  }
  func.func @transform_4(%arg0: i32) -> (i32, i32) {
    %c0_i32 = arith.constant 0 : i32
    %c0_i32_0 = arith.constant 0 : i32
    %c0_i32_1 = arith.constant 0 : i32
    return %c0_i32, %c0_i32_0 : i32, i32
  }
  func.func @transform_5(%arg0: i32) -> (i32, i32) {
    %c0_i32 = arith.constant 0 : i32
    %c0_i32_0 = arith.constant 0 : i32
    %c0_i32_1 = arith.constant 0 : i32
    return %c0_i32, %c0_i32_0 : i32, i32
  }
  func.func @transform_6(%arg0: i32) -> (i32, i32) {
    %c0_i32 = arith.constant 0 : i32
    %c0_i32_0 = arith.constant 0 : i32
    %c0_i32_1 = arith.constant 0 : i32
    return %c0_i32, %c0_i32_0 : i32, i32
  }
  func.func @transform_7(%arg0: i32) -> (i32, i32) {
    %c0_i32 = arith.constant 0 : i32
    %c0_i32_0 = arith.constant 0 : i32
    %c0_i32_1 = arith.constant 0 : i32
    return %c0_i32, %c0_i32_0 : i32, i32
  }
  func.func @transform_8(%arg0: i32) -> (i32, i32) {
    %c0_i32 = arith.constant 0 : i32
    %c0_i32_0 = arith.constant 0 : i32
    %c0_i32_1 = arith.constant 0 : i32
    return %c0_i32, %c0_i32_0 : i32, i32
  }
  func.func @transform_9(%arg0: i32) -> (i32, i32) {
    %c0_i32 = arith.constant 0 : i32
    %c0_i32_0 = arith.constant 0 : i32
    %c0_i32_1 = arith.constant 0 : i32
    return %c0_i32, %c0_i32_0 : i32, i32
  }
  func.func @transform_10(%arg0: i32) -> (i32, i32) {
    %c0_i32 = arith.constant 0 : i32
    %c0_i32_0 = arith.constant 0 : i32
    %c0_i32_1 = arith.constant 0 : i32
    return %c0_i32, %c0_i32_0 : i32, i32
  }
  func.func @transform_11(%arg0: i32) -> (i32, i32) {
    %c0_i32 = arith.constant 0 : i32
    %c0_i32_0 = arith.constant 0 : i32
    %c0_i32_1 = arith.constant 0 : i32
    return %c0_i32, %c0_i32_0 : i32, i32
  }
  func.func @transform_12(%arg0: i32) -> (i32, i32) {
    %c0_i32 = arith.constant 0 : i32
    %c0_i32_0 = arith.constant 0 : i32
    %c0_i32_1 = arith.constant 0 : i32
    return %c0_i32, %c0_i32_0 : i32, i32
  }
  func.func @transform_13(%arg0: i32) -> (i32, i32) {
    %c0_i32 = arith.constant 0 : i32
    %c0_i32_0 = arith.constant 0 : i32
    %c0_i32_1 = arith.constant 0 : i32
    return %c0_i32, %c0_i32_0 : i32, i32
  }
  func.func @transform_14(%arg0: i32) -> (i32, i32) {
    %c0_i32 = arith.constant 0 : i32
    %c0_i32_0 = arith.constant 0 : i32
    %c0_i32_1 = arith.constant 0 : i32
    return %c0_i32, %c0_i32_0 : i32, i32
  }
  func.func @transform_15(%arg0: i32) -> (i32, i32) {
    %c0_i32 = arith.constant 0 : i32
    %c0_i32_0 = arith.constant 0 : i32
    return %arg0, %c0_i32 : i32, i32
  }
}

</mosaic_0001>

<bundles_post_ra>
// kernel: tpu_custom_call.1
= control target key start
LH: loop header
LB: loop body
LE: loop exit
PB: predicated region body
PF: predicated region fallthrough
CT: control target
= control target key end

     0   :  { %20 = vsyncpa [#allocation3], 0  ;;  %s987_s0 = inlined_call_operand.hbm [shape: f32[8,128], index: 0, kind: input, shape index: {}]   ;;  %s988_s1 = inlined_call_operand.hbm [shape: f32[128,128], index: 1, kind: input, shape index: {}]   ;;  %s989_s2 = inlined_call_operand.vmem [shape: f32[1,128], index: 2, kind: input, shape index: {}]   ;;  %s990_s3 = inlined_call_operand.hbm [shape: f32[128,128], index: 3, kind: input, shape index: {}]   ;;  %s991_s4 = inlined_call_operand.vmem [shape: f32[1,128], index: 4, kind: input, shape index: {}]   ;;  %s992_s5 = inlined_call_operand.hbm [shape: f32[128,128], index: 5, kind: input, shape index: {}]   ;;  %s993_s6 = inlined_call_operand.vmem [shape: f32[1,128], index: 6, kind: input, shape index: {}]   ;;  %s994_s7 = inlined_call_operand.hbm [shape: f32[128,128], index: 7, kind: input, shape index: {}]   ;;  %s995_s8 = inlined_call_operand.vmem [shape: f32[1,128], index: 8, kind: input, shape index: {}]   ;;  %s996_s9 = inlined_call_operand.hbm [shape: f32[128,128], index: 9, kind: input, shape index: {}]   ;;  %s997_s10 = inlined_call_operand.vmem [shape: f32[1,128], index: 10, kind: input, shape index: {}]   ;;  %s998_s11 = inlined_call_operand.hbm [shape: f32[128,128], index: 11, kind: input, shape index: {}]   ;;  %s999_s12 = inlined_call_operand.vmem [shape: f32[1,128], index: 12, kind: input, shape index: {}]   ;;  %s1000_s13 = inlined_call_operand.hbm [shape: f32[128,128], index: 13, kind: input, shape index: {}]   ;;  %s1001_s14 = inlined_call_operand.vmem [shape: f32[1,128], index: 14, kind: input, shape index: {}]   ;;  %s1002_s15 = inlined_call_operand.hbm [shape: f32[8,128], index: 15, kind: output, shape index: {}]  }
   0x1   :  { %21 = vsyncpa [#allocation6], 0 }
   0x2   :  { %22 = vsyncpa [#allocation9], 0 }
   0x3   :  { %23 = vsyncpa [#allocation12], 0 }
   0x4   :  { %24 = vsyncpa [#allocation15], 0  ;;  %s41_s20 = sshll.u32 %s988_s1, 4  ;;  %s42_s20 = int_to_ptr.hbm [resolvable:$true] %s41_s20 }
   0x5   :  { %25 = vsyncpa [#allocation4], 0  ;;  %s823_s21 = smov [#allocation5]   ;;  %s71_s25 = sshll.u32 %s992_s5, 4  ;;  %s72_s25 = int_to_ptr.hbm [resolvable:$true] %s71_s25 }
   0x6   :  { %s43_s22 = sshll.u32 %s823_s21, 4  ;;  %s824_s26 = smov 128   ;;  %s44_s22 = int_to_ptr.vmem [resolvable:$true] %s43_s22 }
   0x7   :  { %s825_s27 = smov 8   ;;  %s826_s28 = smov [#allocation8]  }
   0x8   :  { %49 = dma.hbm_to_vmem [thread:$0]  %s42_s20, 2048, %s44_s22, [#allocation6], %s824_s26, %s824_s26, %s825_s27  }
   0x9   :  { %s73_s29 = sshll.u32 %s826_s28, 4  ;;  %s101_s16 = sshll.u32 %s996_s9, 4  ;;  %s74_s29 = int_to_ptr.vmem [resolvable:$true] %s73_s29  ;;  %s102_s16 = int_to_ptr.hbm [resolvable:$true] %s101_s16 }
   0xa   :  { %79 = dma.hbm_to_vmem [thread:$0]  %s72_s25, 2048, %s74_s29, [#allocation9], %s824_s26, %s824_s26, %s825_s27  }
   0xb   :  { %s31_s18 = sshll.u32 %s987_s0, 4  ;;  %s827_s19 = smov [#allocation11]   ;;  %s32_s18 = int_to_ptr.hbm [resolvable:$true] %s31_s18 }
   0xc   :  { %s103_s21 = sshll.u32 %s827_s19, 4  ;;  %s828_s20 = smov [#allocation2]   ;;  %s104_s21 = int_to_ptr.vmem [resolvable:$true] %s103_s21 }
   0xd   :  { %109 = dma.hbm_to_vmem [thread:$0]  %s102_s16, 2048, %s104_s21, [#allocation12], %s824_s26, %s824_s26, %s825_s27  }
   0xe   :  { %s33_s9 = sshll.u32 %s828_s20, 4  ;;  %s56_s24 = sshll.u32 %s990_s3, 4  ;;  %s34_s9 = int_to_ptr.vmem [resolvable:$true] %s33_s9  ;;  %s57_s24 = int_to_ptr.hbm [resolvable:$true] %s56_s24 }
   0xf   :  { %36 = dma.hbm_to_vmem [thread:$0]  %s32_s18, 128, %s34_s9, [#allocation3]  }
  0x10   :  { %s86_s0 = sshll.u32 %s994_s7, 4  ;;  %s829_s29 = smov [#allocation7]   ;;  %s87_s0 = int_to_ptr.hbm [resolvable:$true] %s86_s0 }
  0x11   :  { %s58_s30 = sshll.u32 %s829_s29, 4  ;;  %s830_s1 = smov [#allocation10]   ;;  %s59_s30 = int_to_ptr.vmem [resolvable:$true] %s58_s30 }
  0x12   :  { %64 = dma.hbm_to_vmem [thread:$0]  %s57_s24, 2048, %s59_s30, [#allocation6], %s824_s26, %s824_s26, %s825_s27  }
  0x13   :  { %s88_s16 = sshll.u32 %s830_s1, 4  ;;  %s116_s3 = sshll.u32 %s998_s11, 4  ;;  %s89_s16 = int_to_ptr.vmem [resolvable:$true] %s88_s16  ;;  %s117_s3 = int_to_ptr.hbm [resolvable:$true] %s116_s3 }
  0x14   :  { %94 = dma.hbm_to_vmem [thread:$0]  %s87_s0, 2048, %s89_s16, [#allocation9], %s824_s26, %s824_s26, %s825_s27  }
  0x15   :  { %s131_s19 = sshll.u32 %s1000_s13, 4  ;;  %s831_s21 = smov [#allocation13]   ;;  %s132_s19 = int_to_ptr.hbm [resolvable:$true] %s131_s19 }
  0x16   :  { %s118_s20 = sshll.u32 %s831_s21, 4  ;;  %s832_s9 = smov [#allocation14]   ;;  %s119_s20 = int_to_ptr.vmem [resolvable:$true] %s118_s20 }
  0x17   :  { %124 = dma.hbm_to_vmem [thread:$0]  %s117_s3, 2048, %s119_s20, [#allocation12], %s824_s26, %s824_s26, %s825_s27  }
  0x18   :  { %s133_s11 = sshll.u32 %s832_s9, 4  ;;  %s134_s11 = int_to_ptr.vmem [resolvable:$true] %s133_s11 }
  0x19   :  { %139 = dma.hbm_to_vmem [thread:$0]  %s132_s19, 2048, %s134_s11, [#allocation15], %s824_s26, %s824_s26, %s825_s27  }
  0x1a   :  { %811 = dma.done.wait [#allocation3], 128  }
  0x1b   :  { %812 = vsyncadd [#allocation3], 4294967168 }
  0x1c   :  { %813 = dma.done.wait [#allocation6], 4096  }
  0x1d   :  { %814 = vsyncadd [#allocation6], 4294963200 }
  0x1e   :  { %815 = dma.done.wait [#allocation9], 4096  }
  0x1f   :  { %816 = vsyncadd [#allocation9], 4294963200 }
  0x20   :  { %817 = dma.done.wait [#allocation12], 4096  }
  0x21   :  { %818 = vsyncadd [#allocation12], 4294963200 }
  0x22   :  { %819 = dma.done.wait [#allocation15], 2048  }
  0x23   :  { %820 = vsyncadd [#allocation15], 4294965248  ;;  %v190_v0 = vld [vmem:[#allocation5 + $0x78] sm:$0xff]  ;;  %v189_v1 = vld [vmem:[#allocation5 + $0x70] sm:$0xff]  ;;  %s543_s16 = sshll.u32 %s1002_s15, 4  ;;  %s544_s16 = int_to_ptr.hbm [resolvable:$true] %s543_s16 }
  0x24   :  { %195 = vmatpush.msra.mxu0 %v190_v0  ;;  %v188_v2 = vld [vmem:[#allocation5 + $0x68] sm:$0xff]  ;;  %v187_v3 = vld [vmem:[#allocation5 + $0x60] sm:$0xff]  ;;  %v186_v4 = vld [vmem:[#allocation5 + $0x58] sm:$0xff] }
  0x25   :  { %v185_v5 = vld [vmem:[#allocation5 + $0x50] sm:$0xff]  ;;  %v184_v6 = vld [vmem:[#allocation5 + $0x48] sm:$0xff]  ;;  %v183_v7 = vld [vmem:[#allocation5 + $0x40] sm:$0xff] }
  0x26   :  { %196 = vmatpush.msra.mxu0 %v189_v1  ;;  %v182_v8 = vld [vmem:[#allocation5 + $0x38] sm:$0xff]  ;;  %v181_v9 = vld [vmem:[#allocation5 + $0x30] sm:$0xff]  ;;  %v180_v10 = vld [vmem:[#allocation5 + $0x28] sm:$0xff] }
  0x27   :  { %v179_v11 = vld [vmem:[#allocation5 + $0x20] sm:$0xff]  ;;  %v178_v12 = vld [vmem:[#allocation5 + $0x18] sm:$0xff]  ;;  %v177_v13 = vld [vmem:[#allocation5 + $0x10] sm:$0xff] }
  0x28   :  { %197 = vmatpush.msra.mxu0 %v188_v2  ;;  %v176_v14 = vld [vmem:[#allocation5 + $0x8] sm:$0xff]  ;;  %v175_v15 = vld [vmem:[#allocation5] sm:$0xff]  ;;  %v959_v16 = vld [vmem:[#allocation2] sm:$0xff] }
  0x29   :  { %v250_v17 = vld [vmem:[#allocation11 + $0x78] sm:$0xff]  ;;  %v249_v19 = vld [vmem:[#allocation11 + $0x70] sm:$0xff]  ;;  %v248_v21 = vld [vmem:[#allocation11 + $0x68] sm:$0xff] }
  0x2a   :  { %198 = vmatpush.msra.mxu0 %v187_v3  ;;  %v290_v18 = vld [vmem:[#allocation7 + $0x78] sm:$0xff]  ;;  %255 = vmatpush.msra.mxu1 %v250_v17  ;;  %v289_v20 = vld [vmem:[#allocation7 + $0x70] sm:$0xff]  ;;  %v288_v22 = vld [vmem:[#allocation7 + $0x68] sm:$0xff] }
  0x2b   :  { %295 = vmatpush.msra.mxu2 %v290_v18  ;;  %v247_v23 = vld [vmem:[#allocation11 + $0x60] sm:$0xff]  ;;  %v246_v25 = vld [vmem:[#allocation11 + $0x58] sm:$0xff]  ;;  %v245_v27 = vld [vmem:[#allocation11 + $0x50] sm:$0xff] }
  0x2c   :  { %199 = vmatpush.msra.mxu0 %v186_v4  ;;  %256 = vmatpush.msra.mxu1 %v249_v19  ;;  %v287_v24 = vld [vmem:[#allocation7 + $0x60] sm:$0xff]  ;;  %v286_v26 = vld [vmem:[#allocation7 + $0x58] sm:$0xff]  ;;  %v285_v28 = vld [vmem:[#allocation7 + $0x50] sm:$0xff] }
  0x2d   :  { %296 = vmatpush.msra.mxu2 %v289_v20  ;;  %v244_v29 = vld [vmem:[#allocation11 + $0x48] sm:$0xff]  ;;  %v243_v31 = vld [vmem:[#allocation11 + $0x40] sm:$0xff]  ;;  %v242_v33 = vld [vmem:[#allocation11 + $0x38] sm:$0xff] }
  0x2e   :  { %200 = vmatpush.msra.mxu0 %v185_v5  ;;  %257 = vmatpush.msra.mxu1 %v248_v21  ;;  %v284_v30 = vld [vmem:[#allocation7 + $0x48] sm:$0xff]  ;;  %v283_v32 = vld [vmem:[#allocation7 + $0x40] sm:$0xff]  ;;  %v282_v34 = vld [vmem:[#allocation7 + $0x38] sm:$0xff] }
  0x2f   :  { %297 = vmatpush.msra.mxu2 %v288_v22  ;;  %v241_v35 = vld [vmem:[#allocation11 + $0x30] sm:$0xff]  ;;  %v240_v37 = vld [vmem:[#allocation11 + $0x28] sm:$0xff]  ;;  %v239_v39 = vld [vmem:[#allocation11 + $0x20] sm:$0xff] }
  0x30   :  { %201 = vmatpush.msra.mxu0 %v184_v6  ;;  %258 = vmatpush.msra.mxu1 %v247_v23  ;;  %v281_v36 = vld [vmem:[#allocation7 + $0x30] sm:$0xff]  ;;  %v280_v38 = vld [vmem:[#allocation7 + $0x28] sm:$0xff]  ;;  %v279_v40 = vld [vmem:[#allocation7 + $0x20] sm:$0xff] }
  0x31   :  { %298 = vmatpush.msra.mxu2 %v287_v24  ;;  %v238_v41 = vld [vmem:[#allocation11 + $0x18] sm:$0xff]  ;;  %v237_v43 = vld [vmem:[#allocation11 + $0x10] sm:$0xff]  ;;  %v236_v45 = vld [vmem:[#allocation11 + $0x8] sm:$0xff] }
  0x32   :  { %202 = vmatpush.msra.mxu0 %v183_v7  ;;  %259 = vmatpush.msra.mxu1 %v246_v25  ;;  %v278_v42 = vld [vmem:[#allocation7 + $0x18] sm:$0xff]  ;;  %v277_v44 = vld [vmem:[#allocation7 + $0x10] sm:$0xff]  ;;  %v276_v46 = vld [vmem:[#allocation7 + $0x8] sm:$0xff] }
  0x33   :  { %299 = vmatpush.msra.mxu2 %v286_v26  ;;  %v572_v47 = vld [vmem:[%s989_s2] ss:$0 sm:$0xff]  ;;  %v235_v48 = vld [vmem:[#allocation11] sm:$0xff]  ;;  %v349_v4 = vld [vmem:[#allocation13 + $0x70] sm:$0xff] }
  0x34   :  { %203 = vmatpush.msra.mxu0 %v182_v8  ;;  %260 = vmatpush.msra.mxu1 %v245_v27  ;;  %v275_v49 = vld [vmem:[#allocation7] sm:$0xff]  ;;  %v350_v2 = vld [vmem:[#allocation13 + $0x78] sm:$0xff]  ;;  %v389_v5 = vld [vmem:[#allocation8 + $0x70] sm:$0xff] }
  0x35   :  { %300 = vmatpush.msra.mxu2 %v285_v28  ;;  %v390_v3 = vld [vmem:[#allocation8 + $0x78] sm:$0xff]  ;;  %355 = vmatpush.msra.mxu3 %v350_v2  ;;  %v348_v6 = vld [vmem:[#allocation13 + $0x68] sm:$0xff]  ;;  %v347_v8 = vld [vmem:[#allocation13 + $0x60] sm:$0xff] }
  0x36   :  { %204 = vmatpush.msra.mxu0 %v181_v9  ;;  %261 = vmatpush.msra.mxu1 %v244_v29  ;;  %v388_v7 = vld [vmem:[#allocation8 + $0x68] sm:$0xff]  ;;  %v387_v9 = vld [vmem:[#allocation8 + $0x60] sm:$0xff]  ;;  %v342_v18 = vld [vmem:[#allocation13 + $0x38] sm:$0xff] }
  0x37   :  { %301 = vmatpush.msra.mxu2 %v284_v30  ;;  %356 = vmatpush.msra.mxu3 %v349_v4  ;;  %v383_v17 = vld [vmem:[#allocation8 + $0x40] sm:$0xff]  ;;  %v382_v19 = vld [vmem:[#allocation8 + $0x38] sm:$0xff]  ;;  %v341_v20 = vld [vmem:[#allocation13 + $0x30] sm:$0xff] }
  0x38   :  { %205 = vmatpush.msra.mxu0 %v180_v10  ;;  %262 = vmatpush.msra.mxu1 %v243_v31  ;;  %v346_v10 = vld [vmem:[#allocation13 + $0x58] sm:$0xff]  ;;  %v381_v21 = vld [vmem:[#allocation8 + $0x30] sm:$0xff]  ;;  %v340_v22 = vld [vmem:[#allocation13 + $0x28] sm:$0xff] }
  0x39   :  { %302 = vmatpush.msra.mxu2 %v283_v32  ;;  %357 = vmatpush.msra.mxu3 %v348_v6  ;;  %v380_v23 = vld [vmem:[#allocation8 + $0x28] sm:$0xff]  ;;  %v339_v24 = vld [vmem:[#allocation13 + $0x20] sm:$0xff]  ;;  %v338_v26 = vld [vmem:[#allocation13 + $0x18] sm:$0xff] }
  0x3a   :  { %206 = vmatpush.msra.mxu0 %v179_v11  ;;  %263 = vmatpush.msra.mxu1 %v242_v33  ;;  %v386_v11 = vld [vmem:[#allocation8 + $0x58] sm:$0xff]  ;;  %v379_v25 = vld [vmem:[#allocation8 + $0x20] sm:$0xff]  ;;  %v337_v28 = vld [vmem:[#allocation13 + $0x10] sm:$0xff] }
  0x3b   :  { %303 = vmatpush.msra.mxu2 %v282_v34  ;;  %358 = vmatpush.msra.mxu3 %v347_v8  ;;  %v378_v27 = vld [vmem:[#allocation8 + $0x18] sm:$0xff]  ;;  %v377_v29 = vld [vmem:[#allocation8 + $0x10] sm:$0xff]  ;;  %v336_v30 = vld [vmem:[#allocation13 + $0x8] sm:$0xff] }
  0x3c   :  { %207 = vmatpush.msra.mxu0 %v178_v12  ;;  %264 = vmatpush.msra.mxu1 %v241_v35  ;;  %v345_v12 = vld [vmem:[#allocation13 + $0x50] sm:$0xff]  ;;  %v376_v31 = vld [vmem:[#allocation8 + $0x8] sm:$0xff]  ;;  %v574_v32 = vld [vmem:[%s991_s4] ss:$0 sm:$0xff] }
  0x3d   :  { %304 = vmatpush.msra.mxu2 %v281_v36  ;;  %359 = vmatpush.msra.mxu3 %v346_v10  ;;  %v335_v33 = vld [vmem:[#allocation13] sm:$0xff]  ;;  %v444_v2 = vld [vmem:[#allocation10 + $0x48] sm:$0xff]  ;;  %v442_v6 = vld [vmem:[#allocation10 + $0x38] sm:$0xff] }
  0x3e   :  { %208 = vmatpush.msra.mxu0 %v177_v13  ;;  %265 = vmatpush.msra.mxu1 %v240_v37  ;;  %v385_v13 = vld [vmem:[#allocation8 + $0x50] sm:$0xff]  ;;  %v375_v34 = vld [vmem:[#allocation8] sm:$0xff]  ;;  %v440_v10 = vld [vmem:[#allocation10 + $0x28] sm:$0xff] }
  0x3f   :  { %305 = vmatpush.msra.mxu2 %v280_v38  ;;  %360 = vmatpush.msra.mxu3 %v345_v12  ;;  %v443_v4 = vld [vmem:[#allocation10 + $0x40] sm:$0xff]  ;;  %v441_v8 = vld [vmem:[#allocation10 + $0x30] sm:$0xff] }
  0x40   :  { %209 = vmatpush.msra.mxu0 %v176_v14  ;;  %266 = vmatpush.msra.mxu1 %v239_v39  ;;  %v344_v14 = vld [vmem:[#allocation13 + $0x48] sm:$0xff]  ;;  %v439_v12 = vld [vmem:[#allocation10 + $0x20] sm:$0xff] }
  0x41   :  { %306 = vmatpush.msra.mxu2 %v279_v40  ;;  %361 = vmatpush.msra.mxu3 %v344_v14  ;;  %v438_v14 = vld [vmem:[#allocation10 + $0x18] sm:$0xff] }
  0x42   :  { %210 = vmatpush.msra.mxu0 %v175_v15  ;;  %267 = vmatpush.msra.mxu1 %v238_v41  ;;  %v384_v15 = vld [vmem:[#allocation8 + $0x48] sm:$0xff] }
  0x43   :  { %211 = vmatmul.f32.vlgmr.msra.gmra.mxu0 %v959_v16  ;;  %307 = vmatpush.msra.mxu2 %v278_v42 }
  0x44   :  { %268 = vmatpush.msra.mxu1 %v237_v43  ;;  %395 = vmatpush.msrb.mxu0 %v390_v3  ;;  %v503_v3 = vld [vmem:[#allocation14 + $0x48] sm:$0xff] }
  0x45   :  { %308 = vmatpush.msra.mxu2 %v277_v44  ;;  %v573_v44 = vld [vmem:[%s997_s10] ss:$0 sm:$0xff] }
  0x46   :  { %269 = vmatpush.msra.mxu1 %v236_v45  ;;  %396 = vmatpush.msrb.mxu0 %v389_v5  ;;  %v502_v5 = vld [vmem:[#allocation14 + $0x40] sm:$0xff] }
  0x47   :  { %309 = vmatpush.msra.mxu2 %v276_v46 }
  0x48   :  { %270 = vmatpush.msra.mxu1 %v235_v48  ;;  %397 = vmatpush.msrb.mxu0 %v388_v7  ;;  %v501_v7 = vld [vmem:[#allocation14 + $0x38] sm:$0xff] }
  0x49   :  { %310 = vmatpush.msra.mxu2 %v275_v49 }
  0x4a   :  { %398 = vmatpush.msrb.mxu0 %v387_v9  ;;  %v500_v9 = vld [vmem:[#allocation14 + $0x30] sm:$0xff] }
  0x4c   :  { %399 = vmatpush.msrb.mxu0 %v386_v11  ;;  %v499_v11 = vld [vmem:[#allocation14 + $0x28] sm:$0xff] }
  0x4e   :  { %400 = vmatpush.msrb.mxu0 %v385_v13  ;;  %v498_v13 = vld [vmem:[#allocation14 + $0x20] sm:$0xff] }
  0x50   :  { %401 = vmatpush.msrb.mxu0 %v384_v15  ;;  %v497_v15 = vld [vmem:[#allocation14 + $0x18] sm:$0xff] }
  0x52   :  { %402 = vmatpush.msrb.mxu0 %v383_v17  ;;  %v496_v17 = vld [vmem:[#allocation14 + $0x10] sm:$0xff] }
  0x54   :  { %403 = vmatpush.msrb.mxu0 %v382_v19  ;;  %v436_v19 = vld [vmem:[#allocation10 + $0x8] sm:$0xff] }
  0x56   :  { %404 = vmatpush.msrb.mxu0 %v381_v21  ;;  %v435_v21 = vld [vmem:[#allocation10] sm:$0xff] }
  0x58   :  { %405 = vmatpush.msrb.mxu0 %v380_v23 }
  0x5a   :  { %406 = vmatpush.msrb.mxu0 %v379_v25 }
  0x5c   :  { %407 = vmatpush.msrb.mxu0 %v378_v27 }
  0x5e   :  { %408 = vmatpush.msrb.mxu0 %v377_v29 }
  0x60   :  { %409 = vmatpush.msrb.mxu0 %v376_v31 }
  0x62   :  { %410 = vmatpush.msrb.mxu0 %v375_v34 }
  0xc0   :  { %v212_v50 = vpop.f32.mrf.mxu0 }
  0xc1   :  { %v213_v51 = vadd.f32 %v572_v47, %v212_v50 }
  0xc3   :  { %v557_v52 = vmul.f32 -1.442695, %v213_v51 }
  0xc5   :  { %579 = vpow2.f32 %v557_v52 }
  0xcb   :  { %v580_v53 = vpop.eup %579 }
  0xcc   :  { %v218_v54 = vadd.f32 1.0, %v580_v53 }
  0xce   :  { %581 = vrcp.f32 %v218_v54  ;;  %v230_v58 = vand.u32 2147483648, %v218_v54  ;;  %v228_v60 = vand.u32 2147483647, %v218_v54  ;;  %vm224_vm1 = vweird.f32 %v218_v54 }
  0xd0   :  { %v231_v62 = vor.u32 1.1754944e-38, %v230_v58  ;;  %vm229_vm3 = vcmp.eq.f32.partialorder %v228_v60, 8.507059e+37  ;;  %v448_v58 = vld [vmem:[#allocation10 + $0x68] sm:$0xff]  ;;  %v447_v60 = vld [vmem:[#allocation10 + $0x60] sm:$0xff] }
  0xd4   :  { %v582_v55 = vpop.eup %581 }
  0xd5   :  { %v220_v56 = vmul.f32 %v582_v55, %v218_v54  ;;  %vm225_vm0 = vweird.f32 %v582_v55  ;;  %v450_v54 = vld [vmem:[#allocation10 + $0x78] sm:$0xff] }
  0xd6   :  { %vm226_vm2 = vmor %vm224_vm1, %vm225_vm0  ;;  %455 = vmatpush.msrb.mxu1 %v450_v54  ;;  %v578_v54 = vld [vmem:[%s1001_s14] ss:$0 sm:$0xff] }
  0xd7   :  { %v221_v57 = vsub.f32 1.0, %v220_v56  ;;  %v449_v56 = vld [vmem:[#allocation10 + $0x70] sm:$0xff] }
  0xd8   :  { %456 = vmatpush.msrb.mxu1 %v449_v56 }
  0xd9   :  { %v222_v59 = vmul.f32 %v582_v55, %v221_v57  ;;  %v508_v57 = vld [vmem:[#allocation14 + $0x70] sm:$0xff] }
  0xda   :  { %457 = vmatpush.msrb.mxu1 %v448_v58 }
  0xdb   :  { %v223_v61 = vadd.f32 %v582_v55, %v222_v59  ;;  %v507_v59 = vld [vmem:[#allocation14 + $0x68] sm:$0xff] }
  0xdc   :  { %458 = vmatpush.msrb.mxu1 %v447_v60 }
  0xdd   :  { %v227_v63 = vsel %vm226_vm2, %v582_v55, %v223_v61  ;;  %v509_v55 = vld [vmem:[#allocation14 + $0x78] sm:$0xff]  ;;  %v506_v61 = vld [vmem:[#allocation14 + $0x60] sm:$0xff] }
  0xde   :  { %v232_v0 = vsel %vm229_vm3, %v231_v62, %v227_v63  ;;  %514 = vmatpush.msrb.mxu2 %v509_v55  ;;  %v446_v62 = vld [vmem:[#allocation10 + $0x58] sm:$0xff] }
  0xdf   :  { %v234_v1 = vmul.f32 %v232_v0, %v959_v16  ;;  %v343_v16 = vld [vmem:[#allocation13 + $0x40] sm:$0xff]  ;;  %v505_v63 = vld [vmem:[#allocation14 + $0x58] sm:$0xff]  ;;  %459 = vmatpush.msrb.mxu1 %v446_v62  ;;  %v445_v0 = vld [vmem:[#allocation10 + $0x50] sm:$0xff] }
  0xe0   :  { %362 = vmatpush.msra.mxu3 %v343_v16  ;;  %515 = vmatpush.msrb.mxu2 %v508_v57  ;;  %v437_v16 = vld [vmem:[#allocation10 + $0x10] sm:$0xff] }
  0xe1   :  { %271 = vmatmul.f32.vlgmr.msra.gmra.mxu1 %v234_v1  ;;  %311 = vmatmul.f32.vlgmr.msra.gmra.mxu2 %v234_v1  ;;  %v504_v1 = vld [vmem:[#allocation14 + $0x50] sm:$0xff] }
  0xe2   :  { %363 = vmatpush.msra.mxu3 %v342_v18  ;;  %516 = vmatpush.msrb.mxu2 %v507_v59  ;;  %v575_v18 = vld [vmem:[%s993_s6] ss:$0 sm:$0xff] }
  0xe3   :  { %460 = vmatpush.msrb.mxu1 %v445_v0 }
  0xe4   :  { %364 = vmatpush.msra.mxu3 %v341_v20  ;;  %517 = vmatpush.msrb.mxu2 %v506_v61  ;;  %v495_v20 = vld [vmem:[#allocation14 + $0x8] sm:$0xff] }
  0xe5   :  { %461 = vmatpush.msrb.mxu1 %v444_v2 }
  0xe6   :  { %365 = vmatpush.msra.mxu3 %v340_v22  ;;  %518 = vmatpush.msrb.mxu2 %v505_v63  ;;  %v494_v22 = vld [vmem:[#allocation14] sm:$0xff] }
  0xe7   :  { %462 = vmatpush.msrb.mxu1 %v443_v4 }
  0xe8   :  { %366 = vmatpush.msra.mxu3 %v339_v24  ;;  %519 = vmatpush.msrb.mxu2 %v504_v1 }
  0xe9   :  { %463 = vmatpush.msrb.mxu1 %v442_v6 }
  0xea   :  { %367 = vmatpush.msra.mxu3 %v338_v26  ;;  %520 = vmatpush.msrb.mxu2 %v503_v3 }
  0xeb   :  { %464 = vmatpush.msrb.mxu1 %v441_v8 }
  0xec   :  { %368 = vmatpush.msra.mxu3 %v337_v28  ;;  %521 = vmatpush.msrb.mxu2 %v502_v5 }
  0xed   :  { %465 = vmatpush.msrb.mxu1 %v440_v10 }
  0xee   :  { %369 = vmatpush.msra.mxu3 %v336_v30  ;;  %522 = vmatpush.msrb.mxu2 %v501_v7 }
  0xef   :  { %466 = vmatpush.msrb.mxu1 %v439_v12 }
  0xf0   :  { %370 = vmatpush.msra.mxu3 %v335_v33  ;;  %523 = vmatpush.msrb.mxu2 %v500_v9 }
  0xf1   :  { %467 = vmatpush.msrb.mxu1 %v438_v14 }
  0xf2   :  { %524 = vmatpush.msrb.mxu2 %v499_v11 }
  0xf3   :  { %468 = vmatpush.msrb.mxu1 %v437_v16 }
  0xf4   :  { %525 = vmatpush.msrb.mxu2 %v498_v13 }
  0xf5   :  { %469 = vmatpush.msrb.mxu1 %v436_v19 }
  0xf6   :  { %526 = vmatpush.msrb.mxu2 %v497_v15 }
  0xf7   :  { %470 = vmatpush.msrb.mxu1 %v435_v21 }
  0xf8   :  { %527 = vmatpush.msrb.mxu2 %v496_v17 }
  0xfa   :  { %528 = vmatpush.msrb.mxu2 %v495_v20 }
  0xfc   :  { %529 = vmatpush.msrb.mxu2 %v494_v22 }
 0x15e   :  { %v272_v47 = vpop.f32.mrf.mxu1 }
 0x15f   :  { %v273_v50 = vadd.f32 %v573_v44, %v272_v47 }
 0x164   :  { %v312_v35 = vpop.f32.mrf.mxu2 }
 0x165   :  { %v313_v36 = vadd.f32 %v574_v32, %v312_v35  ;;  %v576_v32 = vld [vmem:[%s999_s12] ss:$0 sm:$0xff] }
 0x167   :  { %v558_v37 = vmul.f32 -1.442695, %v313_v36 }
 0x169   :  { %583 = vpow2.f32 %v558_v37 }
 0x16f   :  { %v584_v38 = vpop.eup %583 }
 0x170   :  { %v318_v39 = vadd.f32 1.0, %v584_v38 }
 0x172   :  { %585 = vrcp.f32 %v318_v39  ;;  %v330_v43 = vand.u32 2147483648, %v318_v39  ;;  %v328_v46 = vand.u32 2147483647, %v318_v39  ;;  %vm324_vm5 = vweird.f32 %v318_v39 }
 0x174   :  { %v331_v49 = vor.u32 1.1754944e-38, %v330_v43  ;;  %vm329_vm7 = vcmp.eq.f32.partialorder %v328_v46, 8.507059e+37 }
 0x178   :  { %v586_v40 = vpop.eup %585 }
 0x179   :  { %v320_v41 = vmul.f32 %v586_v40, %v318_v39  ;;  %vm325_vm4 = vweird.f32 %v586_v40 }
 0x17a   :  { %vm326_vm6 = vmor %vm324_vm5, %vm325_vm4 }
 0x17b   :  { %v321_v42 = vsub.f32 1.0, %v320_v41 }
 0x17d   :  { %v322_v45 = vmul.f32 %v586_v40, %v321_v42  ;;  %v577_v42 = vld [vmem:[%s995_s8] ss:$0 sm:$0xff]  ;;  %s833_s8 = smov [#allocation16]  }
 0x17e   :  { %s541_s29 = sshll.u32 %s833_s8, 4  ;;  %s542_s29 = int_to_ptr.vmem [resolvable:$true] %s541_s29 }
 0x17f   :  { %v323_v48 = vadd.f32 %v586_v40, %v322_v45 }
 0x181   :  { %v327_v51 = vsel %vm326_vm6, %v586_v40, %v323_v48 }
 0x182   :  { %v332_v52 = vsel %vm329_vm7, %v331_v49, %v327_v51 }
 0x183   :  { %v334_v53 = vmul.f32 %v332_v52, %v273_v50 }
 0x185   :  { %371 = vmatmul.f32.vlgmr.msra.gmra.mxu3 %v334_v53  ;;  %411 = vmatmul.f32.vlgmr.msrb.gmra.mxu0 %v334_v53 }
 0x202   :  { %v412_v23 = vpop.f32.mrf.mxu0 }
 0x203   :  { %v413_v24 = vadd.f32 %v575_v18, %v412_v23 }
 0x205   :  { %v559_v25 = vmul.f32 -1.442695, %v413_v24 }
 0x207   :  { %587 = vpow2.f32 %v559_v25 }
 0x208   :  { %v372_v35 = vpop.f32.mrf.mxu3 }
 0x209   :  { %v373_v38 = vadd.f32 %v576_v32, %v372_v35 }
 0x20d   :  { %v588_v26 = vpop.eup %587 }
 0x20e   :  { %v418_v27 = vadd.f32 1.0, %v588_v26 }
 0x210   :  { %589 = vrcp.f32 %v418_v27  ;;  %v430_v31 = vand.u32 2147483648, %v418_v27  ;;  %v428_v34 = vand.u32 2147483647, %v418_v27  ;;  %vm424_vm9 = vweird.f32 %v418_v27 }
 0x212   :  { %v431_v37 = vor.u32 1.1754944e-38, %v430_v31  ;;  %vm429_vm11 = vcmp.eq.f32.partialorder %v428_v34, 8.507059e+37 }
 0x216   :  { %v590_v28 = vpop.eup %589 }
 0x217   :  { %v420_v29 = vmul.f32 %v590_v28, %v418_v27  ;;  %vm425_vm8 = vweird.f32 %v590_v28 }
 0x218   :  { %vm426_vm10 = vmor %vm424_vm9, %vm425_vm8 }
 0x219   :  { %v421_v30 = vsub.f32 1.0, %v420_v29 }
 0x21b   :  { %v422_v33 = vmul.f32 %v590_v28, %v421_v30 }
 0x21d   :  { %v423_v36 = vadd.f32 %v590_v28, %v422_v33 }
 0x21f   :  { %v427_v39 = vsel %vm426_vm10, %v590_v28, %v423_v36 }
 0x220   :  { %v432_v40 = vsel %vm429_vm11, %v431_v37, %v427_v39 }
 0x221   :  { %v434_v41 = vmul.f32 %v432_v40, %v373_v38 }
 0x223   :  { %471 = vmatmul.f32.vlgmr.msrb.gmra.mxu1 %v434_v41  ;;  %530 = vmatmul.f32.vlgmr.msrb.gmra.mxu2 %v434_v41 }
 0x2a0   :  { %v472_v43 = vpop.f32.mrf.mxu1 }
 0x2a1   :  { %v473_v44 = vadd.f32 %v577_v42, %v472_v43 }
 0x2a3   :  { %v560_v45 = vmul.f32 -1.442695, %v473_v44 }
 0x2a5   :  { %591 = vpow2.f32 %v560_v45 }
 0x2a6   :  { %v531_v55 = vpop.f32.mrf.mxu2 }
 0x2a7   :  { %v532_v59 = vadd.f32 %v578_v54, %v531_v55 }
 0x2ab   :  { %v592_v46 = vpop.eup %591 }
 0x2ac   :  { %v478_v47 = vadd.f32 1.0, %v592_v46 }
 0x2ae   :  { %593 = vrcp.f32 %v478_v47  ;;  %v490_v51 = vand.u32 2147483648, %v478_v47  ;;  %v488_v53 = vand.u32 2147483647, %v478_v47  ;;  %vm484_vm13 = vweird.f32 %v478_v47 }
 0x2b0   :  { %v491_v57 = vor.u32 1.1754944e-38, %v490_v51  ;;  %vm489_vm15 = vcmp.eq.f32.partialorder %v488_v53, 8.507059e+37 }
 0x2b4   :  { %v594_v48 = vpop.eup %593 }
 0x2b5   :  { %v480_v49 = vmul.f32 %v594_v48, %v478_v47  ;;  %vm485_vm12 = vweird.f32 %v594_v48 }
 0x2b6   :  { %vm486_vm14 = vmor %vm484_vm13, %vm485_vm12 }
 0x2b7   :  { %v481_v50 = vsub.f32 1.0, %v480_v49 }
 0x2b9   :  { %v482_v52 = vmul.f32 %v594_v48, %v481_v50 }
 0x2bb   :  { %v483_v56 = vadd.f32 %v594_v48, %v482_v52 }
 0x2bd   :  { %v487_v58 = vsel %vm486_vm14, %v594_v48, %v483_v56 }
 0x2be   :  { %v492_v60 = vsel %vm489_vm15, %v491_v57, %v487_v58 }
 0x2bf   :  { %v534_v61 = vmul.f32 %v532_v59, %v492_v60 }
 0x2c1   :  { %535 = vst [vmem:[#allocation16] sm:$0xff] %v534_v61 }
 0x2c2   :  { %546 = dma.vmem_to_hbm [thread:$0]  %s542_s29, 128, %s544_s16, [#allocation4]  }
 0x2c3   :  { %821 = dma.done.wait [#allocation4], 128  }
 0x2c4   :  { %822 = vsyncadd [#allocation4], 4294967168 }
 0x2c5   :  { %551 = vsyncpa [#allocation3], 1 }
 0x2c6   :  { %552 = vsyncpa [#allocation6], 1 }
 0x2c7   :  { %553 = vsyncpa [#allocation9], 1 }
 0x2c8   :  { %554 = vsyncpa [#allocation12], 1 }
 0x2c9   :  { %555 = vsyncpa [#allocation15], 1 }
 0x2ca   :  { %556 = vsyncpa [#allocation4], 1 }

// kernel: tpu_custom_call.1
= control target key start
LH: loop header
LB: loop body
LE: loop exit
PB: predicated region body
PF: predicated region fallthrough
CT: control target
= control target key end

     0   :  { %20 = vsyncpa [#allocation3], 0  ;;  %s987_s0 = inlined_call_operand.hbm [shape: f32[8,128], index: 0, kind: input, shape index: {}]   ;;  %s988_s1 = inlined_call_operand.hbm [shape: f32[128,128], index: 1, kind: input, shape index: {}]   ;;  %s989_s2 = inlined_call_operand.vmem [shape: f32[1,128], index: 2, kind: input, shape index: {}]   ;;  %s990_s3 = inlined_call_operand.hbm [shape: f32[128,128], index: 3, kind: input, shape index: {}]   ;;  %s991_s4 = inlined_call_operand.vmem [shape: f32[1,128], index: 4, kind: input, shape index: {}]   ;;  %s992_s5 = inlined_call_operand.hbm [shape: f32[128,128], index: 5, kind: input, shape index: {}]   ;;  %s993_s6 = inlined_call_operand.vmem [shape: f32[1,128], index: 6, kind: input, shape index: {}]   ;;  %s994_s7 = inlined_call_operand.hbm [shape: f32[128,128], index: 7, kind: input, shape index: {}]   ;;  %s995_s8 = inlined_call_operand.vmem [shape: f32[1,128], index: 8, kind: input, shape index: {}]   ;;  %s996_s9 = inlined_call_operand.hbm [shape: f32[128,128], index: 9, kind: input, shape index: {}]   ;;  %s997_s10 = inlined_call_operand.vmem [shape: f32[1,128], index: 10, kind: input, shape index: {}]   ;;  %s998_s11 = inlined_call_operand.hbm [shape: f32[128,128], index: 11, kind: input, shape index: {}]   ;;  %s999_s12 = inlined_call_operand.vmem [shape: f32[1,128], index: 12, kind: input, shape index: {}]   ;;  %s1000_s13 = inlined_call_operand.hbm [shape: f32[128,128], index: 13, kind: input, shape index: {}]   ;;  %s1001_s14 = inlined_call_operand.vmem [shape: f32[1,128], index: 14, kind: input, shape index: {}]   ;;  %s1002_s15 = inlined_call_operand.hbm [shape: f32[8,128], index: 15, kind: output, shape index: {}]  }
   0x1   :  { %21 = vsyncpa [#allocation6], 0 }
   0x2   :  { %22 = vsyncpa [#allocation9], 0 }
   0x3   :  { %23 = vsyncpa [#allocation12], 0 }
   0x4   :  { %24 = vsyncpa [#allocation15], 0  ;;  %s41_s20 = sshll.u32 %s988_s1, 4  ;;  %s42_s20 = int_to_ptr.hbm [resolvable:$true] %s41_s20 }
   0x5   :  { %25 = vsyncpa [#allocation4], 0  ;;  %s823_s21 = smov [#allocation5]   ;;  %s71_s25 = sshll.u32 %s992_s5, 4  ;;  %s72_s25 = int_to_ptr.hbm [resolvable:$true] %s71_s25 }
   0x6   :  { %s43_s22 = sshll.u32 %s823_s21, 4  ;;  %s824_s26 = smov 128   ;;  %s44_s22 = int_to_ptr.vmem [resolvable:$true] %s43_s22 }
   0x7   :  { %s825_s27 = smov 8   ;;  %s826_s28 = smov [#allocation8]  }
   0x8   :  { %49 = dma.hbm_to_vmem [thread:$0]  %s42_s20, 2048, %s44_s22, [#allocation6], %s824_s26, %s824_s26, %s825_s27  }
   0x9   :  { %s73_s29 = sshll.u32 %s826_s28, 4  ;;  %s101_s16 = sshll.u32 %s996_s9, 4  ;;  %s74_s29 = int_to_ptr.vmem [resolvable:$true] %s73_s29  ;;  %s102_s16 = int_to_ptr.hbm [resolvable:$true] %s101_s16 }
   0xa   :  { %79 = dma.hbm_to_vmem [thread:$0]  %s72_s25, 2048, %s74_s29, [#allocation9], %s824_s26, %s824_s26, %s825_s27  }
   0xb   :  { %s31_s18 = sshll.u32 %s987_s0, 4  ;;  %s827_s19 = smov [#allocation11]   ;;  %s32_s18 = int_to_ptr.hbm [resolvable:$true] %s31_s18 }
   0xc   :  { %s103_s21 = sshll.u32 %s827_s19, 4  ;;  %s828_s20 = smov [#allocation2]   ;;  %s104_s21 = int_to_ptr.vmem [resolvable:$true] %s103_s21 }
   0xd   :  { %109 = dma.hbm_to_vmem [thread:$0]  %s102_s16, 2048, %s104_s21, [#allocation12], %s824_s26, %s824_s26, %s825_s27  }
   0xe   :  { %s33_s9 = sshll.u32 %s828_s20, 4  ;;  %s56_s24 = sshll.u32 %s990_s3, 4  ;;  %s34_s9 = int_to_ptr.vmem [resolvable:$true] %s33_s9  ;;  %s57_s24 = int_to_ptr.hbm [resolvable:$true] %s56_s24 }
   0xf   :  { %36 = dma.hbm_to_vmem [thread:$0]  %s32_s18, 128, %s34_s9, [#allocation3]  }
  0x10   :  { %s86_s0 = sshll.u32 %s994_s7, 4  ;;  %s829_s29 = smov [#allocation7]   ;;  %s87_s0 = int_to_ptr.hbm [resolvable:$true] %s86_s0 }
  0x11   :  { %s58_s30 = sshll.u32 %s829_s29, 4  ;;  %s830_s1 = smov [#allocation10]   ;;  %s59_s30 = int_to_ptr.vmem [resolvable:$true] %s58_s30 }
  0x12   :  { %64 = dma.hbm_to_vmem [thread:$0]  %s57_s24, 2048, %s59_s30, [#allocation6], %s824_s26, %s824_s26, %s825_s27  }
  0x13   :  { %s88_s16 = sshll.u32 %s830_s1, 4  ;;  %s116_s3 = sshll.u32 %s998_s11, 4  ;;  %s89_s16 = int_to_ptr.vmem [resolvable:$true] %s88_s16  ;;  %s117_s3 = int_to_ptr.hbm [resolvable:$true] %s116_s3 }
  0x14   :  { %94 = dma.hbm_to_vmem [thread:$0]  %s87_s0, 2048, %s89_s16, [#allocation9], %s824_s26, %s824_s26, %s825_s27  }
  0x15   :  { %s131_s19 = sshll.u32 %s1000_s13, 4  ;;  %s831_s21 = smov [#allocation13]   ;;  %s132_s19 = int_to_ptr.hbm [resolvable:$true] %s131_s19 }
  0x16   :  { %s118_s20 = sshll.u32 %s831_s21, 4  ;;  %s832_s9 = smov [#allocation14]   ;;  %s119_s20 = int_to_ptr.vmem [resolvable:$true] %s118_s20 }
  0x17   :  { %124 = dma.hbm_to_vmem [thread:$0]  %s117_s3, 2048, %s119_s20, [#allocation12], %s824_s26, %s824_s26, %s825_s27  }
  0x18   :  { %s133_s11 = sshll.u32 %s832_s9, 4  ;;  %s134_s11 = int_to_ptr.vmem [resolvable:$true] %s133_s11 }
  0x19   :  { %139 = dma.hbm_to_vmem [thread:$0]  %s132_s19, 2048, %s134_s11, [#allocation15], %s824_s26, %s824_s26, %s825_s27  }
  0x1a   :  { %811 = dma.done.wait [#allocation3], 128  }
  0x1b   :  { %812 = vsyncadd [#allocation3], 4294967168 }
  0x1c   :  { %813 = dma.done.wait [#allocation6], 4096  }
  0x1d   :  { %814 = vsyncadd [#allocation6], 4294963200 }
  0x1e   :  { %815 = dma.done.wait [#allocation9], 4096  }
  0x1f   :  { %816 = vsyncadd [#allocation9], 4294963200 }
  0x20   :  { %817 = dma.done.wait [#allocation12], 4096  }
  0x21   :  { %818 = vsyncadd [#allocation12], 4294963200 }
  0x22   :  { %819 = dma.done.wait [#allocation15], 2048  }
  0x23   :  { %820 = vsyncadd [#allocation15], 4294965248  ;;  %v190_v0 = vld [vmem:[#allocation5 + $0x78] sm:$0xff]  ;;  %v189_v1 = vld [vmem:[#allocation5 + $0x70] sm:$0xff]  ;;  %s543_s16 = sshll.u32 %s1002_s15, 4  ;;  %s544_s16 = int_to_ptr.hbm [resolvable:$true] %s543_s16 }
  0x24   :  { %195 = vmatpush.msra.mxu0 %v190_v0  ;;  %v188_v2 = vld [vmem:[#allocation5 + $0x68] sm:$0xff]  ;;  %v187_v3 = vld [vmem:[#allocation5 + $0x60] sm:$0xff]  ;;  %v186_v4 = vld [vmem:[#allocation5 + $0x58] sm:$0xff] }
  0x25   :  { %v185_v5 = vld [vmem:[#allocation5 + $0x50] sm:$0xff]  ;;  %v184_v6 = vld [vmem:[#allocation5 + $0x48] sm:$0xff]  ;;  %v183_v7 = vld [vmem:[#allocation5 + $0x40] sm:$0xff] }
  0x26   :  { %196 = vmatpush.msra.mxu0 %v189_v1  ;;  %v182_v8 = vld [vmem:[#allocation5 + $0x38] sm:$0xff]  ;;  %v181_v9 = vld [vmem:[#allocation5 + $0x30] sm:$0xff]  ;;  %v180_v10 = vld [vmem:[#allocation5 + $0x28] sm:$0xff] }
  0x27   :  { %v179_v11 = vld [vmem:[#allocation5 + $0x20] sm:$0xff]  ;;  %v178_v12 = vld [vmem:[#allocation5 + $0x18] sm:$0xff]  ;;  %v177_v13 = vld [vmem:[#allocation5 + $0x10] sm:$0xff] }
  0x28   :  { %197 = vmatpush.msra.mxu0 %v188_v2  ;;  %v176_v14 = vld [vmem:[#allocation5 + $0x8] sm:$0xff]  ;;  %v175_v15 = vld [vmem:[#allocation5] sm:$0xff]  ;;  %v959_v16 = vld [vmem:[#allocation2] sm:$0xff] }
  0x29   :  { %v250_v17 = vld [vmem:[#allocation11 + $0x78] sm:$0xff]  ;;  %v249_v19 = vld [vmem:[#allocation11 + $0x70] sm:$0xff]  ;;  %v248_v21 = vld [vmem:[#allocation11 + $0x68] sm:$0xff] }
  0x2a   :  { %198 = vmatpush.msra.mxu0 %v187_v3  ;;  %v290_v18 = vld [vmem:[#allocation7 + $0x78] sm:$0xff]  ;;  %255 = vmatpush.msra.mxu1 %v250_v17  ;;  %v289_v20 = vld [vmem:[#allocation7 + $0x70] sm:$0xff]  ;;  %v288_v22 = vld [vmem:[#allocation7 + $0x68] sm:$0xff] }
  0x2b   :  { %295 = vmatpush.msra.mxu2 %v290_v18  ;;  %v247_v23 = vld [vmem:[#allocation11 + $0x60] sm:$0xff]  ;;  %v246_v25 = vld [vmem:[#allocation11 + $0x58] sm:$0xff]  ;;  %v245_v27 = vld [vmem:[#allocation11 + $0x50] sm:$0xff] }
  0x2c   :  { %199 = vmatpush.msra.mxu0 %v186_v4  ;;  %256 = vmatpush.msra.mxu1 %v249_v19  ;;  %v287_v24 = vld [vmem:[#allocation7 + $0x60] sm:$0xff]  ;;  %v286_v26 = vld [vmem:[#allocation7 + $0x58] sm:$0xff]  ;;  %v285_v28 = vld [vmem:[#allocation7 + $0x50] sm:$0xff] }
  0x2d   :  { %296 = vmatpush.msra.mxu2 %v289_v20  ;;  %v244_v29 = vld [vmem:[#allocation11 + $0x48] sm:$0xff]  ;;  %v243_v31 = vld [vmem:[#allocation11 + $0x40] sm:$0xff]  ;;  %v242_v33 = vld [vmem:[#allocation11 + $0x38] sm:$0xff] }
  0x2e   :  { %200 = vmatpush.msra.mxu0 %v185_v5  ;;  %257 = vmatpush.msra.mxu1 %v248_v21  ;;  %v284_v30 = vld [vmem:[#allocation7 + $0x48] sm:$0xff]  ;;  %v283_v32 = vld [vmem:[#allocation7 + $0x40] sm:$0xff]  ;;  %v282_v34 = vld [vmem:[#allocation7 + $0x38] sm:$0xff] }
  0x2f   :  { %297 = vmatpush.msra.mxu2 %v288_v22  ;;  %v241_v35 = vld [vmem:[#allocation11 + $0x30] sm:$0xff]  ;;  %v240_v37 = vld [vmem:[#allocation11 + $0x28] sm:$0xff]  ;;  %v239_v39 = vld [vmem:[#allocation11 + $0x20] sm:$0xff] }
  0x30   :  { %201 = vmatpush.msra.mxu0 %v184_v6  ;;  %258 = vmatpush.msra.mxu1 %v247_v23  ;;  %v281_v36 = vld [vmem:[#allocation7 + $0x30] sm:$0xff]  ;;  %v280_v38 = vld [vmem:[#allocation7 + $0x28] sm:$0xff]  ;;  %v279_v40 = vld [vmem:[#allocation7 + $0x20] sm:$0xff] }
  0x31   :  { %298 = vmatpush.msra.mxu2 %v287_v24  ;;  %v238_v41 = vld [vmem:[#allocation11 + $0x18] sm:$0xff]  ;;  %v237_v43 = vld [vmem:[#allocation11 + $0x10] sm:$0xff]  ;;  %v236_v45 = vld [vmem:[#allocation11 + $0x8] sm:$0xff] }
  0x32   :  { %202 = vmatpush.msra.mxu0 %v183_v7  ;;  %259 = vmatpush.msra.mxu1 %v246_v25  ;;  %v278_v42 = vld [vmem:[#allocation7 + $0x18] sm:$0xff]  ;;  %v277_v44 = vld [vmem:[#allocation7 + $0x10] sm:$0xff]  ;;  %v276_v46 = vld [vmem:[#allocation7 + $0x8] sm:$0xff] }
  0x33   :  { %299 = vmatpush.msra.mxu2 %v286_v26  ;;  %v572_v47 = vld [vmem:[%s989_s2] ss:$0 sm:$0xff]  ;;  %v235_v48 = vld [vmem:[#allocation11] sm:$0xff]  ;;  %v349_v4 = vld [vmem:[#allocation13 + $0x70] sm:$0xff] }
  0x34   :  { %203 = vmatpush.msra.mxu0 %v182_v8  ;;  %260 = vmatpush.msra.mxu1 %v245_v27  ;;  %v275_v49 = vld [vmem:[#allocation7] sm:$0xff]  ;;  %v350_v2 = vld [vmem:[#allocation13 + $0x78] sm:$0xff]  ;;  %v389_v5 = vld [vmem:[#allocation8 + $0x70] sm:$0xff] }
  0x35   :  { %300 = vmatpush.msra.mxu2 %v285_v28  ;;  %v390_v3 = vld [vmem:[#allocation8 + $0x78] sm:$0xff]  ;;  %355 = vmatpush.msra.mxu3 %v350_v2  ;;  %v348_v6 = vld [vmem:[#allocation13 + $0x68] sm:$0xff]  ;;  %v347_v8 = vld [vmem:[#allocation13 + $0x60] sm:$0xff] }
  0x36   :  { %204 = vmatpush.msra.mxu0 %v181_v9  ;;  %261 = vmatpush.msra.mxu1 %v244_v29  ;;  %v388_v7 = vld [vmem:[#allocation8 + $0x68] sm:$0xff]  ;;  %v387_v9 = vld [vmem:[#allocation8 + $0x60] sm:$0xff]  ;;  %v342_v18 = vld [vmem:[#allocation13 + $0x38] sm:$0xff] }
  0x37   :  { %301 = vmatpush.msra.mxu2 %v284_v30  ;;  %356 = vmatpush.msra.mxu3 %v349_v4  ;;  %v383_v17 = vld [vmem:[#allocation8 + $0x40] sm:$0xff]  ;;  %v382_v19 = vld [vmem:[#allocation8 + $0x38] sm:$0xff]  ;;  %v341_v20 = vld [vmem:[#allocation13 + $0x30] sm:$0xff] }
  0x38   :  { %205 = vmatpush.msra.mxu0 %v180_v10  ;;  %262 = vmatpush.msra.mxu1 %v243_v31  ;;  %v346_v10 = vld [vmem:[#allocation13 + $0x58] sm:$0xff]  ;;  %v381_v21 = vld [vmem:[#allocation8 + $0x30] sm:$0xff]  ;;  %v340_v22 = vld [vmem:[#allocation13 + $0x28] sm:$0xff] }
  0x39   :  { %302 = vmatpush.msra.mxu2 %v283_v32  ;;  %357 = vmatpush.msra.mxu3 %v348_v6  ;;  %v380_v23 = vld [vmem:[#allocation8 + $0x28] sm:$0xff]  ;;  %v339_v24 = vld [vmem:[#allocation13 + $0x20] sm:$0xff]  ;;  %v338_v26 = vld [vmem:[#allocation13 + $0x18] sm:$0xff] }
  0x3a   :  { %206 = vmatpush.msra.mxu0 %v179_v11  ;;  %263 = vmatpush.msra.mxu1 %v242_v33  ;;  %v386_v11 = vld [vmem:[#allocation8 + $0x58] sm:$0xff]  ;;  %v379_v25 = vld [vmem:[#allocation8 + $0x20] sm:$0xff]  ;;  %v337_v28 = vld [vmem:[#allocation13 + $0x10] sm:$0xff] }
  0x3b   :  { %303 = vmatpush.msra.mxu2 %v282_v34  ;;  %358 = vmatpush.msra.mxu3 %v347_v8  ;;  %v378_v27 = vld [vmem:[#allocation8 + $0x18] sm:$0xff]  ;;  %v377_v29 = vld [vmem:[#allocation8 + $0x10] sm:$0xff]  ;;  %v336_v30 = vld [vmem:[#allocation13 + $0x8] sm:$0xff] }
  0x3c   :  { %207 = vmatpush.msra.mxu0 %v178_v12  ;;  %264 = vmatpush.msra.mxu1 %v241_v35  ;;  %v345_v12 = vld [vmem:[#allocation13 + $0x50] sm:$0xff]  ;;  %v376_v31 = vld [vmem:[#allocation8 + $0x8] sm:$0xff]  ;;  %v574_v32 = vld [vmem:[%s991_s4] ss:$0 sm:$0xff] }
  0x3d   :  { %304 = vmatpush.msra.mxu2 %v281_v36  ;;  %359 = vmatpush.msra.mxu3 %v346_v10  ;;  %v335_v33 = vld [vmem:[#allocation13] sm:$0xff]  ;;  %v444_v2 = vld [vmem:[#allocation10 + $0x48] sm:$0xff]  ;;  %v442_v6 = vld [vmem:[#allocation10 + $0x38] sm:$0xff] }
  0x3e   :  { %208 = vmatpush.msra.mxu0 %v177_v13  ;;  %265 = vmatpush.msra.mxu1 %v240_v37  ;;  %v385_v13 = vld [vmem:[#allocation8 + $0x50] sm:$0xff]  ;;  %v375_v34 = vld [vmem:[#allocation8] sm:$0xff]  ;;  %v440_v10 = vld [vmem:[#allocation10 + $0x28] sm:$0xff] }
  0x3f   :  { %305 = vmatpush.msra.mxu2 %v280_v38  ;;  %360 = vmatpush.msra.mxu3 %v345_v12  ;;  %v443_v4 = vld [vmem:[#allocation10 + $0x40] sm:$0xff]  ;;  %v441_v8 = vld [vmem:[#allocation10 + $0x30] sm:$0xff] }
  0x40   :  { %209 = vmatpush.msra.mxu0 %v176_v14  ;;  %266 = vmatpush.msra.mxu1 %v239_v39  ;;  %v344_v14 = vld [vmem:[#allocation13 + $0x48] sm:$0xff]  ;;  %v439_v12 = vld [vmem:[#allocation10 + $0x20] sm:$0xff] }
  0x41   :  { %306 = vmatpush.msra.mxu2 %v279_v40  ;;  %361 = vmatpush.msra.mxu3 %v344_v14  ;;  %v438_v14 = vld [vmem:[#allocation10 + $0x18] sm:$0xff] }
  0x42   :  { %210 = vmatpush.msra.mxu0 %v175_v15  ;;  %267 = vmatpush.msra.mxu1 %v238_v41  ;;  %v384_v15 = vld [vmem:[#allocation8 + $0x48] sm:$0xff] }
  0x43   :  { %211 = vmatmul.f32.vlgmr.msra.gmra.mxu0 %v959_v16  ;;  %307 = vmatpush.msra.mxu2 %v278_v42 }
  0x44   :  { %268 = vmatpush.msra.mxu1 %v237_v43  ;;  %395 = vmatpush.msrb.mxu0 %v390_v3  ;;  %v503_v3 = vld [vmem:[#allocation14 + $0x48] sm:$0xff] }
  0x45   :  { %308 = vmatpush.msra.mxu2 %v277_v44  ;;  %v573_v44 = vld [vmem:[%s997_s10] ss:$0 sm:$0xff] }
  0x46   :  { %269 = vmatpush.msra.mxu1 %v236_v45  ;;  %396 = vmatpush.msrb.mxu0 %v389_v5  ;;  %v502_v5 = vld [vmem:[#allocation14 + $0x40] sm:$0xff] }
  0x47   :  { %309 = vmatpush.msra.mxu2 %v276_v46 }
  0x48   :  { %270 = vmatpush.msra.mxu1 %v235_v48  ;;  %397 = vmatpush.msrb.mxu0 %v388_v7  ;;  %v501_v7 = vld [vmem:[#allocation14 + $0x38] sm:$0xff] }
  0x49   :  { %310 = vmatpush.msra.mxu2 %v275_v49 }
  0x4a   :  { %398 = vmatpush.msrb.mxu0 %v387_v9  ;;  %v500_v9 = vld [vmem:[#allocation14 + $0x30] sm:$0xff] }
  0x4c   :  { %399 = vmatpush.msrb.mxu0 %v386_v11  ;;  %v499_v11 = vld [vmem:[#allocation14 + $0x28] sm:$0xff] }
  0x4e   :  { %400 = vmatpush.msrb.mxu0 %v385_v13  ;;  %v498_v13 = vld [vmem:[#allocation14 + $0x20] sm:$0xff] }
  0x50   :  { %401 = vmatpush.msrb.mxu0 %v384_v15  ;;  %v497_v15 = vld [vmem:[#allocation14 + $0x18] sm:$0xff] }
  0x52   :  { %402 = vmatpush.msrb.mxu0 %v383_v17  ;;  %v496_v17 = vld [vmem:[#allocation14 + $0x10] sm:$0xff] }
  0x54   :  { %403 = vmatpush.msrb.mxu0 %v382_v19  ;;  %v436_v19 = vld [vmem:[#allocation10 + $0x8] sm:$0xff] }
  0x56   :  { %404 = vmatpush.msrb.mxu0 %v381_v21  ;;  %v435_v21 = vld [vmem:[#allocation10] sm:$0xff] }
  0x58   :  { %405 = vmatpush.msrb.mxu0 %v380_v23 }
  0x5a   :  { %406 = vmatpush.msrb.mxu0 %v379_v25 }
  0x5c   :  { %407 = vmatpush.msrb.mxu0 %v378_v27 }
  0x5e   :  { %408 = vmatpush.msrb.mxu0 %v377_v29 }
  0x60   :  { %409 = vmatpush.msrb.mxu0 %v376_v31 }
  0x62   :  { %410 = vmatpush.msrb.mxu0 %v375_v34 }
  0xc0   :  { %v212_v50 = vpop.f32.mrf.mxu0 }
  0xc1   :  { %v213_v51 = vadd.f32 %v572_v47, %v212_v50 }
  0xc3   :  { %v557_v52 = vmul.f32 -1.442695, %v213_v51 }
  0xc5   :  { %579 = vpow2.f32 %v557_v52 }
  0xcb   :  { %v580_v53 = vpop.eup %579 }
  0xcc   :  { %v218_v54 = vadd.f32 1.0, %v580_v53 }
  0xce   :  { %581 = vrcp.f32 %v218_v54  ;;  %v230_v58 = vand.u32 2147483648, %v218_v54  ;;  %v228_v60 = vand.u32 2147483647, %v218_v54  ;;  %vm224_vm1 = vweird.f32 %v218_v54 }
  0xd0   :  { %v231_v62 = vor.u32 1.1754944e-38, %v230_v58  ;;  %vm229_vm3 = vcmp.eq.f32.partialorder %v228_v60, 8.507059e+37  ;;  %v448_v58 = vld [vmem:[#allocation10 + $0x68] sm:$0xff]  ;;  %v447_v60 = vld [vmem:[#allocation10 + $0x60] sm:$0xff] }
  0xd4   :  { %v582_v55 = vpop.eup %581 }
  0xd5   :  { %v220_v56 = vmul.f32 %v582_v55, %v218_v54  ;;  %vm225_vm0 = vweird.f32 %v582_v55  ;;  %v450_v54 = vld [vmem:[#allocation10 + $0x78] sm:$0xff] }
  0xd6   :  { %vm226_vm2 = vmor %vm224_vm1, %vm225_vm0  ;;  %455 = vmatpush.msrb.mxu1 %v450_v54  ;;  %v578_v54 = vld [vmem:[%s1001_s14] ss:$0 sm:$0xff] }
  0xd7   :  { %v221_v57 = vsub.f32 1.0, %v220_v56  ;;  %v449_v56 = vld [vmem:[#allocation10 + $0x70] sm:$0xff] }
  0xd8   :  { %456 = vmatpush.msrb.mxu1 %v449_v56 }
  0xd9   :  { %v222_v59 = vmul.f32 %v582_v55, %v221_v57  ;;  %v508_v57 = vld [vmem:[#allocation14 + $0x70] sm:$0xff] }
  0xda   :  { %457 = vmatpush.msrb.mxu1 %v448_v58 }
  0xdb   :  { %v223_v61 = vadd.f32 %v582_v55, %v222_v59  ;;  %v507_v59 = vld [vmem:[#allocation14 + $0x68] sm:$0xff] }
  0xdc   :  { %458 = vmatpush.msrb.mxu1 %v447_v60 }
  0xdd   :  { %v227_v63 = vsel %vm226_vm2, %v582_v55, %v223_v61  ;;  %v509_v55 = vld [vmem:[#allocation14 + $0x78] sm:$0xff]  ;;  %v506_v61 = vld [vmem:[#allocation14 + $0x60] sm:$0xff] }
  0xde   :  { %v232_v0 = vsel %vm229_vm3, %v231_v62, %v227_v63  ;;  %514 = vmatpush.msrb.mxu2 %v509_v55  ;;  %v446_v62 = vld [vmem:[#allocation10 + $0x58] sm:$0xff] }
  0xdf   :  { %v234_v1 = vmul.f32 %v232_v0, %v959_v16  ;;  %v343_v16 = vld [vmem:[#allocation13 + $0x40] sm:$0xff]  ;;  %v505_v63 = vld [vmem:[#allocation14 + $0x58] sm:$0xff]  ;;  %459 = vmatpush.msrb.mxu1 %v446_v62  ;;  %v445_v0 = vld [vmem:[#allocation10 + $0x50] sm:$0xff] }
  0xe0   :  { %362 = vmatpush.msra.mxu3 %v343_v16  ;;  %515 = vmatpush.msrb.mxu2 %v508_v57  ;;  %v437_v16 = vld [vmem:[#allocation10 + $0x10] sm:$0xff] }
  0xe1   :  { %271 = vmatmul.f32.vlgmr.msra.gmra.mxu1 %v234_v1  ;;  %311 = vmatmul.f32.vlgmr.msra.gmra.mxu2 %v234_v1  ;;  %v504_v1 = vld [vmem:[#allocation14 + $0x50] sm:$0xff] }
  0xe2   :  { %363 = vmatpush.msra.mxu3 %v342_v18  ;;  %516 = vmatpush.msrb.mxu2 %v507_v59  ;;  %v575_v18 = vld [vmem:[%s993_s6] ss:$0 sm:$0xff] }
  0xe3   :  { %460 = vmatpush.msrb.mxu1 %v445_v0 }
  0xe4   :  { %364 = vmatpush.msra.mxu3 %v341_v20  ;;  %517 = vmatpush.msrb.mxu2 %v506_v61  ;;  %v495_v20 = vld [vmem:[#allocation14 + $0x8] sm:$0xff] }
  0xe5   :  { %461 = vmatpush.msrb.mxu1 %v444_v2 }
  0xe6   :  { %365 = vmatpush.msra.mxu3 %v340_v22  ;;  %518 = vmatpush.msrb.mxu2 %v505_v63  ;;  %v494_v22 = vld [vmem:[#allocation14] sm:$0xff] }
  0xe7   :  { %462 = vmatpush.msrb.mxu1 %v443_v4 }
  0xe8   :  { %366 = vmatpush.msra.mxu3 %v339_v24  ;;  %519 = vmatpush.msrb.mxu2 %v504_v1 }
  0xe9   :  { %463 = vmatpush.msrb.mxu1 %v442_v6 }
  0xea   :  { %367 = vmatpush.msra.mxu3 %v338_v26  ;;  %520 = vmatpush.msrb.mxu2 %v503_v3 }
  0xeb   :  { %464 = vmatpush.msrb.mxu1 %v441_v8 }
  0xec   :  { %368 = vmatpush.msra.mxu3 %v337_v28  ;;  %521 = vmatpush.msrb.mxu2 %v502_v5 }
  0xed   :  { %465 = vmatpush.msrb.mxu1 %v440_v10 }
  0xee   :  { %369 = vmatpush.msra.mxu3 %v336_v30  ;;  %522 = vmatpush.msrb.mxu2 %v501_v7 }
  0xef   :  { %466 = vmatpush.msrb.mxu1 %v439_v12 }
  0xf0   :  { %370 = vmatpush.msra.mxu3 %v335_v33  ;;  %523 = vmatpush.msrb.mxu2 %v500_v9 }
  0xf1   :  { %467 = vmatpush.msrb.mxu1 %v438_v14 }
  0xf2   :  { %524 = vmatpush.msrb.mxu2 %v499_v11 }
  0xf3   :  { %468 = vmatpush.msrb.mxu1 %v437_v16 }
  0xf4   :  { %525 = vmatpush.msrb.mxu2 %v498_v13 }
  0xf5   :  { %469 = vmatpush.msrb.mxu1 %v436_v19 }
  0xf6   :  { %526 = vmatpush.msrb.mxu2 %v497_v15 }
  0xf7   :  { %470 = vmatpush.msrb.mxu1 %v435_v21 }
  0xf8   :  { %527 = vmatpush.msrb.mxu2 %v496_v17 }
  0xfa   :  { %528 = vmatpush.msrb.mxu2 %v495_v20 }
  0xfc   :  { %529 = vmatpush.msrb.mxu2 %v494_v22 }
 0x15e   :  { %v272_v47 = vpop.f32.mrf.mxu1 }
 0x15f   :  { %v273_v50 = vadd.f32 %v573_v44, %v272_v47 }
 0x164   :  { %v312_v35 = vpop.f32.mrf.mxu2 }
 0x165   :  { %v313_v36 = vadd.f32 %v574_v32, %v312_v35  ;;  %v576_v32 = vld [vmem:[%s999_s12] ss:$0 sm:$0xff] }
 0x167   :  { %v558_v37 = vmul.f32 -1.442695, %v313_v36 }
 0x169   :  { %583 = vpow2.f32 %v558_v37 }
 0x16f   :  { %v584_v38 = vpop.eup %583 }
 0x170   :  { %v318_v39 = vadd.f32 1.0, %v584_v38 }
 0x172   :  { %585 = vrcp.f32 %v318_v39  ;;  %v330_v43 = vand.u32 2147483648, %v318_v39  ;;  %v328_v46 = vand.u32 2147483647, %v318_v39  ;;  %vm324_vm5 = vweird.f32 %v318_v39 }
 0x174   :  { %v331_v49 = vor.u32 1.1754944e-38, %v330_v43  ;;  %vm329_vm7 = vcmp.eq.f32.partialorder %v328_v46, 8.507059e+37 }
 0x178   :  { %v586_v40 = vpop.eup %585 }
 0x179   :  { %v320_v41 = vmul.f32 %v586_v40, %v318_v39  ;;  %vm325_vm4 = vweird.f32 %v586_v40 }
 0x17a   :  { %vm326_vm6 = vmor %vm324_vm5, %vm325_vm4 }
 0x17b   :  { %v321_v42 = vsub.f32 1.0, %v320_v41 }
 0x17d   :  { %v322_v45 = vmul.f32 %v586_v40, %v321_v42  ;;  %v577_v42 = vld [vmem:[%s995_s8] ss:$0 sm:$0xff]  ;;  %s833_s8 = smov [#allocation16]  }
 0x17e   :  { %s541_s29 = sshll.u32 %s833_s8, 4  ;;  %s542_s29 = int_to_ptr.vmem [resolvable:$true] %s541_s29 }
 0x17f   :  { %v323_v48 = vadd.f32 %v586_v40, %v322_v45 }
 0x181   :  { %v327_v51 = vsel %vm326_vm6, %v586_v40, %v323_v48 }
 0x182   :  { %v332_v52 = vsel %vm329_vm7, %v331_v49, %v327_v51 }
 0x183   :  { %v334_v53 = vmul.f32 %v332_v52, %v273_v50 }
 0x185   :  { %371 = vmatmul.f32.vlgmr.msra.gmra.mxu3 %v334_v53  ;;  %411 = vmatmul.f32.vlgmr.msrb.gmra.mxu0 %v334_v53 }
 0x202   :  { %v412_v23 = vpop.f32.mrf.mxu0 }
 0x203   :  { %v413_v24 = vadd.f32 %v575_v18, %v412_v23 }
 0x205   :  { %v559_v25 = vmul.f32 -1.442695, %v413_v24 }
 0x207   :  { %587 = vpow2.f32 %v559_v25 }
 0x208   :  { %v372_v35 = vpop.f32.mrf.mxu3 }
 0x209   :  { %v373_v38 = vadd.f32 %v576_v32, %v372_v35 }
 0x20d   :  { %v588_v26 = vpop.eup %587 }
 0x20e   :  { %v418_v27 = vadd.f32 1.0, %v588_v26 }
 0x210   :  { %589 = vrcp.f32 %v418_v27  ;;  %v430_v31 = vand.u32 2147483648, %v418_v27  ;;  %v428_v34 = vand.u32 2147483647, %v418_v27  ;;  %vm424_vm9 = vweird.f32 %v418_v27 }
 0x212   :  { %v431_v37 = vor.u32 1.1754944e-38, %v430_v31  ;;  %vm429_vm11 = vcmp.eq.f32.partialorder %v428_v34, 8.507059e+37 }
 0x216   :  { %v590_v28 = vpop.eup %589 }
 0x217   :  { %v420_v29 = vmul.f32 %v590_v28, %v418_v27  ;;  %vm425_vm8 = vweird.f32 %v590_v28 }
 0x218   :  { %vm426_vm10 = vmor %vm424_vm9, %vm425_vm8 }
 0x219   :  { %v421_v30 = vsub.f32 1.0, %v420_v29 }
 0x21b   :  { %v422_v33 = vmul.f32 %v590_v28, %v421_v30 }
 0x21d   :  { %v423_v36 = vadd.f32 %v590_v28, %v422_v33 }
 0x21f   :  { %v427_v39 = vsel %vm426_vm10, %v590_v28, %v423_v36 }
 0x220   :  { %v432_v40 = vsel %vm429_vm11, %v431_v37, %v427_v39 }
 0x221   :  { %v434_v41 = vmul.f32 %v432_v40, %v373_v38 }
 0x223   :  { %471 = vmatmul.f32.vlgmr.msrb.gmra.mxu1 %v434_v41  ;;  %530 = vmatmul.f32.vlgmr.msrb.gmra.mxu2 %v434_v41 }
 0x2a0   :  { %v472_v43 = vpop.f32.mrf.mxu1 }
 0x2a1   :  { %v473_v44 = vadd.f32 %v577_v42, %v472_v43 }
 0x2a3   :  { %v560_v45 = vmul.f32 -1.442695, %v473_v44 }
 0x2a5   :  { %591 = vpow2.f32 %v560_v45 }
 0x2a6   :  { %v531_v55 = vpop.f32.mrf.mxu2 }
 0x2a7   :  { %v532_v59 = vadd.f32 %v578_v54, %v531_v55 }
 0x2ab   :  { %v592_v46 = vpop.eup %591 }
 0x2ac   :  { %v478_v47 = vadd.f32 1.0, %v592_v46 }
 0x2ae   :  { %593 = vrcp.f32 %v478_v47  ;;  %v490_v51 = vand.u32 2147483648, %v478_v47  ;;  %v488_v53 = vand.u32 2147483647, %v478_v47  ;;  %vm484_vm13 = vweird.f32 %v478_v47 }
 0x2b0   :  { %v491_v57 = vor.u32 1.1754944e-38, %v490_v51  ;;  %vm489_vm15 = vcmp.eq.f32.partialorder %v488_v53, 8.507059e+37 }
 0x2b4   :  { %v594_v48 = vpop.eup %593 }
 0x2b5   :  { %v480_v49 = vmul.f32 %v594_v48, %v478_v47  ;;  %vm485_vm12 = vweird.f32 %v594_v48 }
 0x2b6   :  { %vm486_vm14 = vmor %vm484_vm13, %vm485_vm12 }
 0x2b7   :  { %v481_v50 = vsub.f32 1.0, %v480_v49 }
 0x2b9   :  { %v482_v52 = vmul.f32 %v594_v48, %v481_v50 }
 0x2bb   :  { %v483_v56 = vadd.f32 %v594_v48, %v482_v52 }
 0x2bd   :  { %v487_v58 = vsel %vm486_vm14, %v594_v48, %v483_v56 }
 0x2be   :  { %v492_v60 = vsel %vm489_vm15, %v491_v57, %v487_v58 }
 0x2bf   :  { %v534_v61 = vmul.f32 %v532_v59, %v492_v60 }
 0x2c1   :  { %535 = vst [vmem:[#allocation16] sm:$0xff] %v534_v61 }
 0x2c2   :  { %546 = dma.vmem_to_hbm [thread:$0]  %s542_s29, 128, %s544_s16, [#allocation4]  }
 0x2c3   :  { %821 = dma.done.wait [#allocation4], 128  }
 0x2c4   :  { %822 = vsyncadd [#allocation4], 4294967168 }
 0x2c5   :  { %551 = vsyncpa [#allocation3], 1 }
 0x2c6   :  { %552 = vsyncpa [#allocation6], 1 }
 0x2c7   :  { %553 = vsyncpa [#allocation9], 1 }
 0x2c8   :  { %554 = vsyncpa [#allocation12], 1 }
 0x2c9   :  { %555 = vsyncpa [#allocation15], 1 }
 0x2ca   :  { %556 = vsyncpa [#allocation4], 1 }

</bundles_post_ra>
